<compile_context>
chip_gen: v7x
topology: tpu7x:2x2x1
jax: 0.10.0
libtpu: 0.0.40
codegen_flags: <defaults>
</compile_context>

<pallas_src>
import numpy as np

import jax
import jax.numpy as jnp
from jax.experimental import pallas as pl
from jax.experimental.pallas import tpu as pltpu

_TM = 512                       # row tile for the GEMM grid
_LANES = 128                    # lane-dense padding for the channel (N) dim
_VMEM_LIMIT = 48 * 1024 * 1024  # > 16/32 MiB scoped defaults, < v7x 64 MiB physical


def _round_up(x, m):
    return (x + m - 1) // m * m


def _padded_rows(m):
    tm = min(_TM, _round_up(m, 8))
    return _round_up(m, tm)


# ---------------- Pallas kernels ------------------------------------------------------


def _dual_conv_bn_kernel(x_ref, wr_ref, br_ref, w1_ref, b1_ref, res_ref, h_ref):
    """Two GEMMs sharing the same (tm, K) im2col block.

    residual = x @ Wr + br           (conv + BN, no ReLU)
    h        = relu(x @ W1 + b1)     (conv + BN + ReLU)
    BN scale is pre-folded into Wr / W1 (bf16); accumulation and bias add are fp32.
    """
    x = x_ref[...]
    acc_r = jnp.dot(x, wr_ref[...], preferred_element_type=jnp.float32)
    res_ref[...] = (acc_r + br_ref[...]).astype(res_ref.dtype)
    acc_1 = jnp.dot(x, w1_ref[...], preferred_element_type=jnp.float32)
    h_ref[...] = jnp.maximum(acc_1 + b1_ref[...], 0.0).astype(h_ref.dtype)


def _conv_bn_res_relu_kernel(x_ref, w_ref, b_ref, res_ref, o_ref):
    """y = relu(x @ W + b + residual)   (conv2 + BN + skip add + final ReLU)."""
    acc = jnp.dot(x_ref[...], w_ref[...], preferred_element_type=jnp.float32)
    out = acc + b_ref[...] + res_ref[...].astype(jnp.float32)
    o_ref[...] = jnp.maximum(out, 0.0).astype(o_ref.dtype)


# ---------------- pallas_call wrappers ------------------------------------------------


def dual_conv_gemm(patches, w_res, b_res, w_c1, b_c1, *, out_dtype=jnp.bfloat16):
    """Fused (residual, conv1) GEMMs over a shared bf16 im2col block."""
    Mp, K = patches.shape
    Np = w_res.shape[-1]
    tm = min(_TM, Mp)
    row = lambda i: (i, 0)
    rep = lambda i: (0, 0)
    return pl.pallas_call(
        _dual_conv_bn_kernel,
        out_shape=(jax.ShapeDtypeStruct((Mp, Np), out_dtype),
                   jax.ShapeDtypeStruct((Mp, Np), out_dtype)),
        grid_spec=pltpu.PrefetchScalarGridSpec(
            num_scalar_prefetch=0,
            grid=(Mp // tm,),
            in_specs=[pl.BlockSpec((tm, K), row),
                      pl.BlockSpec((K, Np), rep),
                      pl.BlockSpec((1, Np), rep),
                      pl.BlockSpec((K, Np), rep),
                      pl.BlockSpec((1, Np), rep)],
            out_specs=(pl.BlockSpec((tm, Np), row),
                       pl.BlockSpec((tm, Np), row)),
        ),
        compiler_params=pltpu.CompilerParams(
            dimension_semantics=("parallel",),
            vmem_limit_bytes=_VMEM_LIMIT),
    )(patches, w_res, b_res, w_c1, b_c1)


def conv_gemm_add_relu(patches, w, b, residual, *, out_dtype=jnp.float32):
    """conv2 GEMM + folded BN bias + residual add + final ReLU."""
    Mp, K = patches.shape
    Np = w.shape[-1]
    tm = min(_TM, Mp)
    row = lambda i: (i, 0)
    rep = lambda i: (0, 0)
    return pl.pallas_call(
        _conv_bn_res_relu_kernel,
        out_shape=jax.ShapeDtypeStruct((Mp, Np), out_dtype),
        grid_spec=pltpu.PrefetchScalarGridSpec(
            num_scalar_prefetch=0,
            grid=(Mp // tm,),
            in_specs=[pl.BlockSpec((tm, K), row),
                      pl.BlockSpec((K, Np), rep),
                      pl.BlockSpec((1, Np), rep),
                      pl.BlockSpec((tm, Np), row)],
            out_specs=pl.BlockSpec((tm, Np), row),
        ),
        compiler_params=pltpu.CompilerParams(
            dimension_semantics=("parallel",),
            vmem_limit_bytes=_VMEM_LIMIT),
    )(patches, w, b, residual)


# ---------------- JAX layout / folding glue -------------------------------------------


def _im2col_3x3(x):
    """(B, H, W, C) -> (B*H*W, 9*C) patches for a padding=1, stride=1, 3x3 conv."""
    B, H, W, C = x.shape
    xp = jnp.pad(x, ((0, 0), (1, 1), (1, 1), (0, 0)))
    cols = [xp[:, dy:dy + H, dx:dx + W, :] for dy in range(3) for dx in range(3)]
    return jnp.concatenate(cols, axis=-1).reshape(B * H * W, 9 * C)


def _pad_rows(a, mp):
    m = a.shape[0]
    return a if m == mp else jnp.pad(a, ((0, mp - m), (0, 0)))


def _fold_bn(w, conv_bias, gamma, beta, mean, var, n_pad, eps=1e-5):
    """Fold inference BN + conv bias into (bf16 scaled weights, fp32 bias), lane-dense."""
    cout = w.shape[-1]
    scale = gamma / jnp.sqrt(var + eps)
    wm = w.reshape(-1, cout) * scale[None, :]          # BN scale folded into weights
    bias = (conv_bias - mean) * scale + beta
    wm = jnp.pad(wm, ((0, 0), (0, n_pad - cout))).astype(jnp.bfloat16)
    bias = jnp.pad(bias, (0, n_pad - cout)).reshape(1, n_pad).astype(jnp.float32)
    return wm, bias


def _interp_matrix(osize, isize, scale):
    """Static PyTorch-compatible (align_corners=False) 1-D bilinear matrix (osize, isize)."""
    c = (np.arange(osize, dtype=np.float64) + 0.5) / float(scale) - 0.5
    c = np.clip(c, 0.0, isize - 1.0)
    lo = np.floor(c).astype(np.int64)
    hi = np.minimum(lo + 1, isize - 1)
    frac = (c - lo).astype(np.float32)
    m = np.zeros((osize, isize), dtype=np.float32)
    m[np.arange(osize), lo] += 1.0 - frac
    m[np.arange(osize), hi] += frac
    return jnp.asarray(m)


def bilinear_upsample(x, scale):
    """F.interpolate(mode='bilinear', align_corners=False) on NHWC input via two small
    static-matrix contractions (no HBM gathers)."""
    B, H, W, C = x.shape
    OH, OW = int(H * scale), int(W * scale)
    wy = _interp_matrix(OH, H, scale)
    wx = _interp_matrix(OW, W, scale)
    y = jnp.einsum('oh,bhwc->bowc', wy, x)
    return jnp.einsum('pw,bowc->bopc', wx, y)


# ---------------- Module --------------------------------------------------------------


class UpConv2DPallas:
    """JAX/Pallas re-implementation of UpConv2D.forward (NHWC activations)."""

    def __init__(self, in_channels, out_channels, scale, key):
        self.scale = scale
        self.out_channels = out_channels
        keys = jax.random.split(key, 6)

        def conv_init(k, cin, cout):
            kw, kb = jax.random.split(k)
            fan_in = cin * 9
            bound = 1.0 / jnp.sqrt(jnp.float32(fan_in))
            w = jax.random.uniform(kw, (3, 3, cin, cout), jnp.float32, -bound, bound)
            b = jax.random.uniform(kb, (cout,), jnp.float32, -bound, bound)
            return w, b

        def bn_init(k, c):
            kg, kb, km, kv = jax.random.split(k, 4)
            gamma = 1.0 + 0.1 * jax.random.normal(kg, (c,), jnp.float32)
            beta = 0.1 * jax.random.normal(kb, (c,), jnp.float32)
            mean = 0.1 * jax.random.normal(km, (c,), jnp.float32)
            var = jnp.abs(1.0 + 0.1 * jax.random.normal(kv, (c,), jnp.float32))
            return gamma, beta, mean, var

        self.res_w, self.res_b = conv_init(keys[0], in_channels, out_channels)
        self.res_bn = bn_init(keys[1], out_channels)
        self.c1_w, self.c1_b = conv_init(keys[2], in_channels, out_channels)
        self.c1_bn = bn_init(keys[3], out_channels)
        self.c2_w, self.c2_b = conv_init(keys[4], out_channels, out_channels)
        self.c2_bn = bn_init(keys[5], out_channels)

    def __call__(self, x):
        # x: (B, H, W, Cin) NHWC
        out = x
        if self.scale != 1:
            out = bilinear_upsample(out, self.scale)

        B, H, W, _ = out.shape
        cout = self.out_channels
        n_pad = _round_up(cout, _LANES)          # lane-dense GEMM N dimension
        M = B * H * W
        Mp = _padded_rows(M)

        # Fold BN (running stats) + conv bias into the GEMM operands (trace time, free).
        wr, br = _fold_bn(self.res_w, self.res_b, *self.res_bn, n_pad)
        w1, b1 = _fold_bn(self.c1_w, self.c1_b, *self.c1_bn, n_pad)
        w2, b2 = _fold_bn(self.c2_w, self.c2_b, *self.c2_bn, n_pad)

        # One shared bf16 im2col feeds BOTH the residual conv and conv1 (fused kernel).
        p1 = _pad_rows(_im2col_3x3(out.astype(jnp.bfloat16)), Mp)
        res_flat, h_flat = dual_conv_gemm(p1, wr, br, w1, b1)   # both bf16, (Mp, n_pad)

        # conv1 output back to NHWC with its real channel count for conv2's im2col
        # (avoids blowing up K by the lane padding).
        h = h_flat[:M, :cout].reshape(B, H, W, cout)
        p2 = _pad_rows(_im2col_3x3(h), Mp)                      # bf16 (Mp, 9*cout)

        # conv2 + BN + residual add + final ReLU, fp32 output.
        y = conv_gemm_add_relu(p2, w2, b2, res_flat)
        return y[:M, :cout].reshape(B, H, W, cout)


# ---------------- Demo ----------------------------------------------------------------


if __name__ == "__main__":
    key = jax.random.PRNGKey(0)
    kparam, kx = jax.random.split(key)

    B, Cin, Cout, H, W, scale = 2, 4, 8, 16, 16, 2

    model = UpConv2DPallas(Cin, Cout, scale, kparam)

    # PyTorch-style NCHW input, converted to the kernels' NHWC layout.
    x_nchw = jax.random.normal(kx, (B, Cin, H, W), jnp.float32)
    x_nhwc = jnp.transpose(x_nchw, (0, 2, 3, 1))

    y = jax.jit(model.__call__)(x_nhwc)
    y = jax.block_until_ready(y)

    assert y.shape == (B, H * scale, W * scale, Cout), y.shape
    assert bool(jnp.all(y >= 0.0))  # final ReLU
    print("KERNEL_OK")
</pallas_src>

<mosaic_0001>
module attributes {stable_mosaic.version = 11 : i64} {
  func.func @_dual_conv_bn_kernel(%arg0: i32, %arg1: memref<512x36xbf16, #tpu.memory_space<vmem>>, %arg2: memref<36x128xbf16, #tpu.memory_space<vmem>>, %arg3: memref<1x128xf32, #tpu.memory_space<vmem>>, %arg4: memref<36x128xbf16, #tpu.memory_space<vmem>>, %arg5: memref<1x128xf32, #tpu.memory_space<vmem>>, %arg6: memref<512x128xbf16, #tpu.memory_space<vmem>>, %arg7: memref<512x128xbf16, #tpu.memory_space<vmem>>) attributes {dimension_semantics = [#tpu.dimension_semantics<parallel>], iteration_bounds = array<i64: 4>, scalar_prefetch = 0 : i64, scratch_operands = 0 : i64, tpu.core_type = #tpu.core_type<tc>, window_params = [{transform_indices = @transform_0, window_bounds = array<i64: 512, 36>}, {pipeline_mode = #tpu.pipeline_mode<synchronous>, transform_indices = @transform_1, window_bounds = array<i64: 36, 128>}, {pipeline_mode = #tpu.pipeline_mode<synchronous>, transform_indices = @transform_2, window_bounds = array<i64: 1, 128>}, {pipeline_mode = #tpu.pipeline_mode<synchronous>, transform_indices = @transform_3, window_bounds = array<i64: 36, 128>}, {pipeline_mode = #tpu.pipeline_mode<synchronous>, transform_indices = @transform_4, window_bounds = array<i64: 1, 128>}, {transform_indices = @transform_5, window_bounds = array<i64: 512, 128>}, {transform_indices = @transform_6, window_bounds = array<i64: 512, 128>}]} {
    %c0 = arith.constant 0 : index
    %c0_0 = arith.constant 0 : index
    %0 = vector.load %arg1[%c0, %c0_0] : memref<512x36xbf16, #tpu.memory_space<vmem>>, vector<512x36xbf16>
    %c0_1 = arith.constant 0 : index
    %c0_2 = arith.constant 0 : index
    %1 = vector.load %arg2[%c0_1, %c0_2] : memref<36x128xbf16, #tpu.memory_space<vmem>>, vector<36x128xbf16>
    %cst = arith.constant dense<0.000000e+00> : vector<512x128xf32>
    %2 = tpu.matmul %0, %1, %cst {dimension_numbers = #tpu.dot_dimension_numbers<[1], [0], [0], [1], [0, 0, 1, 1], [], []>} : vector<512x36xbf16>, vector<36x128xbf16>, vector<512x128xf32> -> vector<512x128xf32>
    %c0_3 = arith.constant 0 : index
    %c0_4 = arith.constant 0 : index
    %3 = vector.load %arg3[%c0_3, %c0_4] : memref<1x128xf32, #tpu.memory_space<vmem>>, vector<1x128xf32>
    %4 = vector.broadcast %3 : vector<1x128xf32> to vector<512x128xf32>
    %5 = arith.addf %2, %4 : vector<512x128xf32>
    %6 = arith.truncf %5 : vector<512x128xf32> to vector<512x128xbf16>
    %c0_5 = arith.constant 0 : index
    %c0_6 = arith.constant 0 : index
    %7 = vector.load %arg6[%c0_5, %c0_6] : memref<512x128xbf16, #tpu.memory_space<vmem>>, vector<512x128xbf16>
    tpu.vector_store %arg6[%c0_5, %c0_6], %6 {strides = array<i32>} : memref<512x128xbf16, #tpu.memory_space<vmem>>, vector<512x128xbf16>,
    %c0_7 = arith.constant 0 : index
    %c0_8 = arith.constant 0 : index
    %8 = vector.load %arg4[%c0_7, %c0_8] : memref<36x128xbf16, #tpu.memory_space<vmem>>, vector<36x128xbf16>
    %cst_9 = arith.constant dense<0.000000e+00> : vector<512x128xf32>
    %9 = tpu.matmul %0, %8, %cst_9 {dimension_numbers = #tpu.dot_dimension_numbers<[1], [0], [0], [1], [0, 0, 1, 1], [], []>} : vector<512x36xbf16>, vector<36x128xbf16>, vector<512x128xf32> -> vector<512x128xf32>
    %c0_10 = arith.constant 0 : index
    %c0_11 = arith.constant 0 : index
    %10 = vector.load %arg5[%c0_10, %c0_11] : memref<1x128xf32, #tpu.memory_space<vmem>>, vector<1x128xf32>
    %11 = vector.broadcast %10 : vector<1x128xf32> to vector<512x128xf32>
    %12 = arith.addf %9, %11 : vector<512x128xf32>
    %cst_12 = arith.constant 0.000000e+00 : f32
    %13 = vector.broadcast %cst_12 : f32 to vector<512x128xf32>
    %14 = arith.maximumf %12, %13 : vector<512x128xf32>
    %15 = arith.truncf %14 : vector<512x128xf32> to vector<512x128xbf16>
    %c0_13 = arith.constant 0 : index
    %c0_14 = arith.constant 0 : index
    %16 = vector.load %arg7[%c0_13, %c0_14] : memref<512x128xbf16, #tpu.memory_space<vmem>>, vector<512x128xbf16>
    tpu.vector_store %arg7[%c0_13, %c0_14], %15 {strides = array<i32>} : memref<512x128xbf16, #tpu.memory_space<vmem>>, vector<512x128xbf16>,
    return
  }
  func.func @transform_0(%arg0: i32) -> (i32, i32) {
    %c0_i32 = arith.constant 0 : i32
    %c0_i32_0 = arith.constant 0 : i32
    return %arg0, %c0_i32 : i32, i32
  }
  func.func @transform_1(%arg0: i32) -> (i32, i32) {
    %c0_i32 = arith.constant 0 : i32
    %c0_i32_0 = arith.constant 0 : i32
    %c0_i32_1 = arith.constant 0 : i32
    return %c0_i32, %c0_i32_0 : i32, i32
  }
  func.func @transform_2(%arg0: i32) -> (i32, i32) {
    %c0_i32 = arith.constant 0 : i32
    %c0_i32_0 = arith.constant 0 : i32
    %c0_i32_1 = arith.constant 0 : i32
    return %c0_i32, %c0_i32_0 : i32, i32
  }
  func.func @transform_3(%arg0: i32) -> (i32, i32) {
    %c0_i32 = arith.constant 0 : i32
    %c0_i32_0 = arith.constant 0 : i32
    %c0_i32_1 = arith.constant 0 : i32
    return %c0_i32, %c0_i32_0 : i32, i32
  }
  func.func @transform_4(%arg0: i32) -> (i32, i32) {
    %c0_i32 = arith.constant 0 : i32
    %c0_i32_0 = arith.constant 0 : i32
    %c0_i32_1 = arith.constant 0 : i32
    return %c0_i32, %c0_i32_0 : i32, i32
  }
  func.func @transform_5(%arg0: i32) -> (i32, i32) {
    %c0_i32 = arith.constant 0 : i32
    %c0_i32_0 = arith.constant 0 : i32
    return %arg0, %c0_i32 : i32, i32
  }
  func.func @transform_6(%arg0: i32) -> (i32, i32) {
    %c0_i32 = arith.constant 0 : i32
    %c0_i32_0 = arith.constant 0 : i32
    return %arg0, %c0_i32 : i32, i32
  }
}

module attributes {stable_mosaic.version = 11 : i64} {
  func.func @_conv_bn_res_relu_kernel(%arg0: i32, %arg1: memref<512x72xbf16, #tpu.memory_space<vmem>>, %arg2: memref<72x128xbf16, #tpu.memory_space<vmem>>, %arg3: memref<1x128xf32, #tpu.memory_space<vmem>>, %arg4: memref<512x128xbf16, #tpu.memory_space<vmem>>, %arg5: memref<512x128xf32, #tpu.memory_space<vmem>>) attributes {dimension_semantics = [#tpu.dimension_semantics<parallel>], iteration_bounds = array<i64: 4>, scalar_prefetch = 0 : i64, scratch_operands = 0 : i64, tpu.core_type = #tpu.core_type<tc>, window_params = [{transform_indices = @transform_0, window_bounds = array<i64: 512, 72>}, {pipeline_mode = #tpu.pipeline_mode<synchronous>, transform_indices = @transform_1, window_bounds = array<i64: 72, 128>}, {pipeline_mode = #tpu.pipeline_mode<synchronous>, transform_indices = @transform_2, window_bounds = array<i64: 1, 128>}, {transform_indices = @transform_3, window_bounds = array<i64: 512, 128>}, {transform_indices = @transform_4, window_bounds = array<i64: 512, 128>}]} {
    %c0 = arith.constant 0 : index
    %c0_0 = arith.constant 0 : index
    %0 = vector.load %arg1[%c0, %c0_0] : memref<512x72xbf16, #tpu.memory_space<vmem>>, vector<512x72xbf16>
    %c0_1 = arith.constant 0 : index
    %c0_2 = arith.constant 0 : index
    %1 = vector.load %arg2[%c0_1, %c0_2] : memref<72x128xbf16, #tpu.memory_space<vmem>>, vector<72x128xbf16>
    %cst = arith.constant dense<0.000000e+00> : vector<512x128xf32>
    %2 = tpu.matmul %0, %1, %cst {dimension_numbers = #tpu.dot_dimension_numbers<[1], [0], [0], [1], [0, 0, 1, 1], [], []>} : vector<512x72xbf16>, vector<72x128xbf16>, vector<512x128xf32> -> vector<512x128xf32>
    %c0_3 = arith.constant 0 : index
    %c0_4 = arith.constant 0 : index
    %3 = vector.load %arg3[%c0_3, %c0_4] : memref<1x128xf32, #tpu.memory_space<vmem>>, vector<1x128xf32>
    %4 = vector.broadcast %3 : vector<1x128xf32> to vector<512x128xf32>
    %5 = arith.addf %2, %4 : vector<512x128xf32>
    %c0_5 = arith.constant 0 : index
    %c0_6 = arith.constant 0 : index
    %6 = vector.load %arg4[%c0_5, %c0_6] : memref<512x128xbf16, #tpu.memory_space<vmem>>, vector<512x128xbf16>
    %7 = arith.extf %6 : vector<512x128xbf16> to vector<512x128xf32>
    %8 = arith.addf %5, %7 : vector<512x128xf32>
    %cst_7 = arith.constant 0.000000e+00 : f32
    %9 = vector.broadcast %cst_7 : f32 to vector<512x128xf32>
    %10 = arith.maximumf %8, %9 : vector<512x128xf32>
    %c0_8 = arith.constant 0 : index
    %c0_9 = arith.constant 0 : index
    %11 = vector.load %arg5[%c0_8, %c0_9] : memref<512x128xf32, #tpu.memory_space<vmem>>, vector<512x128xf32>
    tpu.vector_store %arg5[%c0_8, %c0_9], %10 {strides = array<i32>} : memref<512x128xf32, #tpu.memory_space<vmem>>, vector<512x128xf32>,
    return
  }
  func.func @transform_0(%arg0: i32) -> (i32, i32) {
    %c0_i32 = arith.constant 0 : i32
    %c0_i32_0 = arith.constant 0 : i32
    return %arg0, %c0_i32 : i32, i32
  }
  func.func @transform_1(%arg0: i32) -> (i32, i32) {
    %c0_i32 = arith.constant 0 : i32
    %c0_i32_0 = arith.constant 0 : i32
    %c0_i32_1 = arith.constant 0 : i32
    return %c0_i32, %c0_i32_0 : i32, i32
  }
  func.func @transform_2(%arg0: i32) -> (i32, i32) {
    %c0_i32 = arith.constant 0 : i32
    %c0_i32_0 = arith.constant 0 : i32
    %c0_i32_1 = arith.constant 0 : i32
    return %c0_i32, %c0_i32_0 : i32, i32
  }
  func.func @transform_3(%arg0: i32) -> (i32, i32) {
    %c0_i32 = arith.constant 0 : i32
    %c0_i32_0 = arith.constant 0 : i32
    return %arg0, %c0_i32 : i32, i32
  }
  func.func @transform_4(%arg0: i32) -> (i32, i32) {
    %c0_i32 = arith.constant 0 : i32
    %c0_i32_0 = arith.constant 0 : i32
    return %arg0, %c0_i32 : i32, i32
  }
}

</mosaic_0001>

<bundles_post_ra>
// kernel: a_call__.2
= control target key start
LH: loop header
LB: loop body
LE: loop exit
PB: predicated region body
PF: predicated region fallthrough
CT: control target
= control target key end

     0   :  { %s3080_s21 = smov 0   ;;  %s3427_s0 = inlined_call_operand.vmem [shape: bf16[2048,36], index: 0, kind: input, shape index: {}]   ;;  %s3428_s1 = inlined_call_operand.vmem [shape: bf16[36,128], index: 1, kind: input, shape index: {}]   ;;  %s3429_s2 = inlined_call_operand.vmem [shape: f32[1,128], index: 2, kind: input, shape index: {}]   ;;  %s3430_s3 = inlined_call_operand.vmem [shape: bf16[36,128], index: 3, kind: input, shape index: {}]   ;;  %s3431_s4 = inlined_call_operand.vmem [shape: f32[1,128], index: 4, kind: input, shape index: {}]   ;;  %s3432_s5 = inlined_call_operand.vmem [shape: bf16[2048,128], index: 5, kind: output, shape index: {0}]   ;;  %s3433_s6 = inlined_call_operand.vmem [shape: bf16[2048,128], index: 6, kind: output, shape index: {1}]  }
   0x1 LB: > { %s2024_s22 = sadd.s32 4294967295, %s3043_s21   ;;  %p2028_p0 = scmp.ge.s32.totalorder %s3043_s21, 1  ;;  %s3043_s21 = sphi %s3080_s21, %s17_s21  }
   0x2   : > { %p216_p1 = scmp.lt.s32.totalorder %s3043_s21, 5 }
   0x4   : > { %p217_p2 = pnand %p2028_p0, %p216_p1 }
   0x5   : > { %v2999_v0 = vld [vmem:[%s3428_s1] sm:$0xff] (!%p217_p2)   ;;  %s2029_s27 = sshll.u32 (!%p217_p2), %s2024_s22, 6  ;;  %v3001_v2 = vld [vmem:[%s3428_s1 + $0x8] sm:$0xff] (!%p217_p2)   ;;  %v3003_v4 = vld [vmem:[%s3428_s1 + $0x10] ss:$0 sps:$4 sm:$0x33] (!%p217_p2)  }
   0x6   : > { %220 = sbr.rel (%p217_p2) target bundleno = 361 (0x169), region = 40  ;;  %v3000_v1 = vld [vmem:[%s3430_s3] sm:$0xff] (!%p217_p2)   ;;  %2849 = vmatprep.subr.bf16.mxu0 (!%p217_p2), %v2999_v0  ;;  %p252_p3 = scmp.lt.s32.totalorder (!%p217_p2), %s2029_s27, 255  ;;  %v3002_v3 = vld [vmem:[%s3430_s3 + $0x8] sm:$0xff] (!%p217_p2)   ;;  %vm618_vm0 = vcmask (!%p217_p2), 1041408   ;;  %vm521_vm1 = vcmask (!%p217_p2), 293888  }
   0x7   : > { %2919 = vmatprep.subr.bf16.mxu1 (!%p217_p2), %v3000_v1  ;;  %2850 = vmatpush3.bf16.msra.mxu0 (!%p217_p2), %v2999_v0  ;;  %v3004_v5 = vld [vmem:[%s3430_s3 + $0x10] ss:$0 sps:$4 sm:$0x33] (!%p217_p2)   ;;  %v620_v6 = vsel (!%p217_p2), %vm618_vm0, %v3003_v4, 0  ;;  %v3213_v40 = vld [vmem:[%s3429_s2] ss:$0 sm:$0xff] (!%p217_p2) }
   0x8   : > { %2920 = vmatpush3.bf16.msra.mxu1 (!%p217_p2), %v3000_v1  ;;  %2851 = vmatprep.subr.bf16.mxu0 (!%p217_p2), %v3001_v2  ;;  %v1259_v8 = vsel (!%p217_p2), %vm618_vm0, %v3004_v5, 0  ;;  %v3218_v41 = vld [vmem:[%s3431_s4] ss:$0 sm:$0xff] (!%p217_p2) }
   0x9   : > { %2921 = vmatprep.subr.bf16.mxu1 (!%p217_p2), %v3002_v3 }
   0xb   : > { %2852 = vmatpush3.bf16.msra.mxu0 (!%p217_p2), %v3001_v2 }
   0xc   : > { %2922 = vmatpush3.bf16.msra.mxu1 (!%p217_p2), %v3002_v3  ;;  %2989 = vmatprep.subr.msk.bf16.mxu0 (!%p217_p2), %vm618_vm0, %v3003_v4 }
   0xd   : > { %s3435_s27 = smov (!%p252_p3, %s2029_s27), 255  ;;  %2990 = vmatprep.subr.msk.bf16.mxu1 %vm618_vm0, %v3004_v5 }
   0xe   : > { %s3106_s12 = sshll.u32 %s3435_s27, 2 }
   0xf   : > { %s3112_s15 = scalar_lea.vmem %s3427_s0, %s3106_s12  ;;  %2854 = vmatpush3.bf16.msra.mxu0 %v620_v6  ;;  %s3229_s23 = scalar_lea.vmem %s3432_s5, %s3106_s12 }
  0x10   : > { %v3005_v7 = vld [vmem:[%s3112_s15] sm:$0xff]   ;;  %v3006_v9 = vld [vmem:[%s3112_s15 + $0x8] sm:$0xff]   ;;  %v3007_v10 = vld [vmem:[%s3112_s15 + $0x10] sm:$0xff]   ;;  %2924 = vmatpush3.bf16.msra.mxu1 %v1259_v8  ;;  %s3239_s26 = scalar_lea.vmem %s3433_s6, %s3106_s12 }
  0x11   : > { %2855 = vmatprep.mubr.msk.bf16.mxu0 %vm521_vm1, %v3005_v7  ;;  %2925 = vmatprep.mubr.msk.bf16.mxu1 %vm521_vm1, %v3005_v7  ;;  %v3008_v11 = vld [vmem:[%s3112_s15 + $0x18] sm:$0xff]   ;;  %v3009_v12 = vld [vmem:[%s3112_s15 + $0x20] sm:$0xff]   ;;  %v3010_v13 = vld [vmem:[%s3112_s15 + $0x28] sm:$0xff]  }
  0x12   : > { %2856 = vmatmul.mubr.msk.bf16.vlgmr.msra.gmra.mrb[0].mxu0 %vm521_vm1, %v3006_v9  ;;  %v3011_v14 = vld [vmem:[%s3112_s15 + $0x30] sm:$0xff]   ;;  %v3012_v15 = vld [vmem:[%s3112_s15 + $0x38] sm:$0xff]   ;;  %v3013_v16 = vld [vmem:[%s3112_s15 + $0x40] sm:$0xff]  }
  0x13   : > { %2926 = vmatmul.mubr.msk.bf16.vlgmr.msra.gmra.mrb[0].mxu1 %vm521_vm1, %v3006_v9  ;;  %2859 = vmatprep.mubr.msk.bf16.mxu0 %vm521_vm1, %v3007_v10  ;;  %v3014_v17 = vld [vmem:[%s3112_s15 + $0x48] sm:$0xff]   ;;  %v3015_v18 = vld [vmem:[%s3112_s15 + $0x50] sm:$0xff]   ;;  %v3016_v19 = vld [vmem:[%s3112_s15 + $0x58] sm:$0xff]  }
  0x14   : > { %2929 = vmatprep.mubr.msk.bf16.mxu1 %vm521_vm1, %v3007_v10  ;;  %v3017_v20 = vld [vmem:[%s3112_s15 + $0x60] sm:$0xff]   ;;  %v3018_v21 = vld [vmem:[%s3112_s15 + $0x68] sm:$0xff]   ;;  %v3019_v22 = vld [vmem:[%s3112_s15 + $0x70] sm:$0xff]  }
  0x15   : > { %v3020_v23 = vld [vmem:[%s3112_s15 + $0x78] sm:$0xff]   ;;  %v3021_v24 = vld [vmem:[%s3112_s15 + $0x80] sm:$0xff]   ;;  %v3022_v25 = vld [vmem:[%s3112_s15 + $0x88] sm:$0xff]  }
  0x16   : > { %v3023_v26 = vld [vmem:[%s3112_s15 + $0x90] sm:$0xff]   ;;  %v3024_v27 = vld [vmem:[%s3112_s15 + $0x98] sm:$0xff]   ;;  %v3025_v28 = vld [vmem:[%s3112_s15 + $0xa0] sm:$0xff]  }
  0x17   : > { %v3026_v29 = vld [vmem:[%s3112_s15 + $0xa8] sm:$0xff]   ;;  %v3027_v30 = vld [vmem:[%s3112_s15 + $0xb0] sm:$0xff]   ;;  %v3028_v31 = vld [vmem:[%s3112_s15 + $0xb8] sm:$0xff]  }
  0x18   : > { %v3029_v32 = vld [vmem:[%s3112_s15 + $0xc0] sm:$0xff]   ;;  %v3030_v33 = vld [vmem:[%s3112_s15 + $0xc8] sm:$0xff]   ;;  %v3031_v34 = vld [vmem:[%s3112_s15 + $0xd0] sm:$0xff]  }
  0x19   : > { %v3032_v35 = vld [vmem:[%s3112_s15 + $0xd8] sm:$0xff]   ;;  %v3033_v36 = vld [vmem:[%s3112_s15 + $0xe0] sm:$0xff]   ;;  %v3034_v37 = vld [vmem:[%s3112_s15 + $0xe8] sm:$0xff]  }
  0x1a   : > { %2860 = vmatmul.mubr.msk.bf16.gmra.mrb[4].mxu0 %vm521_vm1, %v3008_v11  ;;  %v3035_v38 = vld [vmem:[%s3112_s15 + $0xf0] sm:$0xff]   ;;  %v3036_v39 = vld [vmem:[%s3112_s15 + $0xf8] sm:$0xff]  }
  0x1b   : > { %2930 = vmatmul.mubr.msk.bf16.gmra.mrb[4].mxu1 %vm521_vm1, %v3008_v11  ;;  %2863 = vmatprep.mubr.msk.bf16.mxu0 %vm521_vm1, %v3009_v12 }
  0x1c   : > { %2933 = vmatprep.mubr.msk.bf16.mxu1 %vm521_vm1, %v3009_v12 }
  0x22   : > { %2864 = vmatmul.mubr.msk.bf16.gmra.mrb[8].mxu0 %vm521_vm1, %v3010_v13 }
  0x23   : > { %2934 = vmatmul.mubr.msk.bf16.gmra.mrb[8].mxu1 %vm521_vm1, %v3010_v13  ;;  %2867 = vmatprep.mubr.msk.bf16.mxu0 %vm521_vm1, %v3011_v14 }
  0x24   : > { %2937 = vmatprep.mubr.msk.bf16.mxu1 %vm521_vm1, %v3011_v14 }
  0x2a   : > { %2868 = vmatmul.mubr.msk.bf16.gmra.mrb[12].mxu0 %vm521_vm1, %v3012_v15 }
  0x2b   : > { %2938 = vmatmul.mubr.msk.bf16.gmra.mrb[12].mxu1 %vm521_vm1, %v3012_v15  ;;  %2871 = vmatprep.mubr.msk.bf16.mxu0 %vm521_vm1, %v3013_v16 }
  0x2c   : > { %2941 = vmatprep.mubr.msk.bf16.mxu1 %vm521_vm1, %v3013_v16 }
  0x32   : > { %2872 = vmatmul.mubr.msk.bf16.gmra.mrb[16].mxu0 %vm521_vm1, %v3014_v17 }
  0x33   : > { %2942 = vmatmul.mubr.msk.bf16.gmra.mrb[16].mxu1 %vm521_vm1, %v3014_v17  ;;  %2875 = vmatprep.mubr.msk.bf16.mxu0 %vm521_vm1, %v3015_v18 }
  0x34   : > { %2945 = vmatprep.mubr.msk.bf16.mxu1 %vm521_vm1, %v3015_v18 }
  0x3a   : > { %2876 = vmatmul.mubr.msk.bf16.gmra.mrb[20].mxu0 %vm521_vm1, %v3016_v19 }
  0x3b   : > { %2946 = vmatmul.mubr.msk.bf16.gmra.mrb[20].mxu1 %vm521_vm1, %v3016_v19  ;;  %2879 = vmatprep.mubr.msk.bf16.mxu0 %vm521_vm1, %v3017_v20 }
  0x3c   : > { %2949 = vmatprep.mubr.msk.bf16.mxu1 %vm521_vm1, %v3017_v20 }
  0x42   : > { %2880 = vmatmul.mubr.msk.bf16.gmra.mrb[24].mxu0 %vm521_vm1, %v3018_v21 }
  0x43   : > { %2950 = vmatmul.mubr.msk.bf16.gmra.mrb[24].mxu1 %vm521_vm1, %v3018_v21  ;;  %2883 = vmatprep.mubr.msk.bf16.mxu0 %vm521_vm1, %v3019_v22 }
  0x44   : > { %2953 = vmatprep.mubr.msk.bf16.mxu1 %vm521_vm1, %v3019_v22 }
  0x4a   : > { %2884 = vmatmul.mubr.msk.bf16.gmra.mrb[28].mxu0 %vm521_vm1, %v3020_v23 }
  0x4b   : > { %2954 = vmatmul.mubr.msk.bf16.gmra.mrb[28].mxu1 %vm521_vm1, %v3020_v23  ;;  %2887 = vmatprep.mubr.msk.bf16.mxu0 %vm521_vm1, %v3021_v24 }
  0x4c   : > { %2957 = vmatprep.mubr.msk.bf16.mxu1 %vm521_vm1, %v3021_v24 }
  0x52   : > { %2888 = vmatmul.mubr.msk.bf16.gmra.mrb[32].mxu0 %vm521_vm1, %v3022_v25 }
  0x53   : > { %2958 = vmatmul.mubr.msk.bf16.gmra.mrb[32].mxu1 %vm521_vm1, %v3022_v25  ;;  %2891 = vmatprep.mubr.msk.bf16.mxu0 %vm521_vm1, %v3023_v26 }
  0x54   : > { %2961 = vmatprep.mubr.msk.bf16.mxu1 %vm521_vm1, %v3023_v26 }
  0x5a   : > { %2892 = vmatmul.mubr.msk.bf16.gmra.mrb[36].mxu0 %vm521_vm1, %v3024_v27 }
  0x5b   : > { %2962 = vmatmul.mubr.msk.bf16.gmra.mrb[36].mxu1 %vm521_vm1, %v3024_v27  ;;  %2895 = vmatprep.mubr.msk.bf16.mxu0 %vm521_vm1, %v3025_v28 }
  0x5c   : > { %2965 = vmatprep.mubr.msk.bf16.mxu1 %vm521_vm1, %v3025_v28 }
  0x62   : > { %2896 = vmatmul.mubr.msk.bf16.gmra.mrb[40].mxu0 %vm521_vm1, %v3026_v29 }
  0x63   : > { %2966 = vmatmul.mubr.msk.bf16.gmra.mrb[40].mxu1 %vm521_vm1, %v3026_v29  ;;  %2899 = vmatprep.mubr.msk.bf16.mxu0 %vm521_vm1, %v3027_v30 }
  0x64   : > { %2969 = vmatprep.mubr.msk.bf16.mxu1 %vm521_vm1, %v3027_v30 }
  0x6a   : > { %2900 = vmatmul.mubr.msk.bf16.gmra.mrb[44].mxu0 %vm521_vm1, %v3028_v31 }
  0x6b   : > { %2970 = vmatmul.mubr.msk.bf16.gmra.mrb[44].mxu1 %vm521_vm1, %v3028_v31  ;;  %2903 = vmatprep.mubr.msk.bf16.mxu0 %vm521_vm1, %v3029_v32 }
  0x6c   : > { %2973 = vmatprep.mubr.msk.bf16.mxu1 %vm521_vm1, %v3029_v32 }
  0x72   : > { %2904 = vmatmul.mubr.msk.bf16.gmra.mrb[48].mxu0 %vm521_vm1, %v3030_v33 }
  0x73   : > { %2974 = vmatmul.mubr.msk.bf16.gmra.mrb[48].mxu1 %vm521_vm1, %v3030_v33  ;;  %2907 = vmatprep.mubr.msk.bf16.mxu0 %vm521_vm1, %v3031_v34 }
  0x74   : > { %2977 = vmatprep.mubr.msk.bf16.mxu1 %vm521_vm1, %v3031_v34 }
  0x7a   : > { %2908 = vmatmul.mubr.msk.bf16.gmra.mrb[52].mxu0 %vm521_vm1, %v3032_v35 }
  0x7b   : > { %2978 = vmatmul.mubr.msk.bf16.gmra.mrb[52].mxu1 %vm521_vm1, %v3032_v35  ;;  %2911 = vmatprep.mubr.msk.bf16.mxu0 %vm521_vm1, %v3033_v36 }
  0x7c   : > { %2981 = vmatprep.mubr.msk.bf16.mxu1 %vm521_vm1, %v3033_v36 }
  0x82   : > { %2912 = vmatmul.mubr.msk.bf16.gmra.mrb[56].mxu0 %vm521_vm1, %v3034_v37 }
  0x83   : > { %2982 = vmatmul.mubr.msk.bf16.gmra.mrb[56].mxu1 %vm521_vm1, %v3034_v37  ;;  %2915 = vmatprep.mubr.msk.bf16.mxu0 %vm521_vm1, %v3035_v38 }
  0x84   : > { %2985 = vmatprep.mubr.msk.bf16.mxu1 %vm521_vm1, %v3035_v38 }
  0x8a   : > { %2916 = vmatmul.mubr.msk.bf16.gmra.mrb[60].mxu0 %vm521_vm1, %v3036_v39 }
  0x8b   : > { %2986 = vmatmul.mubr.msk.bf16.gmra.mrb[60].mxu1 %vm521_vm1, %v3036_v39 }
  0xe5   : > { %v2857_v42 = vpop.f32.mrb[0].mxu0 }
  0xe6   : > { %v665_v43 = vadd.f32 %v2857_v42, %v3213_v40  ;;  %v2927_v44 = vpop.f32.mrb[0].mxu1  ;;  %v656_v45 = vpop.f32.mrb[1].mxu0 }
  0xe7   : > { %v1304_v46 = vadd.f32 %v2927_v44, %v3218_v41  ;;  %v657_v47 = vadd.f32 %v3213_v40, %v656_v45  ;;  %v1295_v48 = vpop.f32.mrb[1].mxu1  ;;  %v2858_v49 = vpop.f32.mrb[2].mxu0 }
  0xe8   : > { %v1296_v50 = vadd.f32 %v3218_v41, %v1295_v48  ;;  %v668_v51 = vadd.f32 %v2858_v49, %v3213_v40  ;;  %v2928_v52 = vpop.f32.mrb[2].mxu1  ;;  %v659_v53 = vpop.f32.mrb[3].mxu0 }
  0xe9   : > { %v1307_v54 = vadd.f32 %v2928_v52, %v3218_v41  ;;  %v660_v55 = vadd.f32 %v3213_v40, %v659_v53  ;;  %v1298_v56 = vpop.f32.mrb[3].mxu1  ;;  %v1552_v59 = vmax.f32 %v1304_v46, 0.0 }
  0xea   : > { %v2405_v57 = vpack.c.bf16 %v668_v51, %v665_v43  ;;  %v1299_v58 = vadd.f32 %v3218_v41, %v1298_v56  ;;  %v1550_v62 = vmax.f32 %v1296_v50, 0.0 }
  0xeb   : > { %v1553_v60 = vmax.f32 %v1307_v54, 0.0  ;;  %v2400_v61 = vpack.c.bf16 %v660_v55, %v657_v47 }
  0xec   : > { %2717 = vst [vmem:[%s3229_s23 + $0x8] sm:$0xff] %v2405_v57   ;;  %v1551_v63 = vmax.f32 %v1299_v58, 0.0 }
  0xed   : > { %v2565_v0 = vpack.c.bf16 %v1553_v60, %v1552_v59  ;;  %2401 = vst [vmem:[%s3229_s23] sm:$0xff] %v2400_v61   ;;  %v2861_v1 = vpop.f32.mrb[4].mxu0 }
  0xee   : > { %v2560_v2 = vpack.c.bf16 %v1551_v63, %v1550_v62  ;;  %v681_v3 = vadd.f32 %v2861_v1, %v3213_v40  ;;  %v2931_v4 = vpop.f32.mrb[4].mxu1  ;;  %v672_v5 = vpop.f32.mrb[5].mxu0 }
  0xef   : > { %2748 = vst [vmem:[%s3239_s26 + $0x8] sm:$0xff] %v2565_v0   ;;  %v1320_v6 = vadd.f32 %v2931_v4, %v3218_v41  ;;  %v673_v7 = vadd.f32 %v3213_v40, %v672_v5  ;;  %v1311_v8 = vpop.f32.mrb[5].mxu1  ;;  %v2862_v9 = vpop.f32.mrb[6].mxu0 }
  0xf0   : > { %2561 = vst [vmem:[%s3239_s26] sm:$0xff] %v2560_v2   ;;  %v1312_v10 = vadd.f32 %v3218_v41, %v1311_v8  ;;  %v684_v11 = vadd.f32 %v2862_v9, %v3213_v40  ;;  %v2932_v12 = vpop.f32.mrb[6].mxu1  ;;  %v675_v13 = vpop.f32.mrb[7].mxu0 }
  0xf1   : > { %v1323_v14 = vadd.f32 %v2932_v12, %v3218_v41  ;;  %v676_v15 = vadd.f32 %v3213_v40, %v675_v13  ;;  %v1314_v16 = vpop.f32.mrb[7].mxu1  ;;  %v1556_v19 = vmax.f32 %v1320_v6, 0.0 }
  0xf2   : > { %v2415_v17 = vpack.c.bf16 %v684_v11, %v681_v3  ;;  %v1315_v18 = vadd.f32 %v3218_v41, %v1314_v16  ;;  %v1554_v22 = vmax.f32 %v1312_v10, 0.0 }
  0xf3   : > { %v1557_v20 = vmax.f32 %v1323_v14, 0.0  ;;  %v2410_v21 = vpack.c.bf16 %v676_v15, %v673_v7 }
  0xf4   : > { %2719 = vst [vmem:[%s3229_s23 + $0x18] sm:$0xff] %v2415_v17   ;;  %v1555_v23 = vmax.f32 %v1315_v18, 0.0 }
  0xf5   : > { %v2575_v24 = vpack.c.bf16 %v1557_v20, %v1556_v19  ;;  %2718 = vst [vmem:[%s3229_s23 + $0x10] sm:$0xff] %v2410_v21   ;;  %v2865_v25 = vpop.f32.mrb[8].mxu0 }
  0xf6   : > { %v2570_v26 = vpack.c.bf16 %v1555_v23, %v1554_v22  ;;  %v697_v27 = vadd.f32 %v2865_v25, %v3213_v40  ;;  %v2935_v28 = vpop.f32.mrb[8].mxu1  ;;  %v688_v29 = vpop.f32.mrb[9].mxu0 }
  0xf7   : > { %2750 = vst [vmem:[%s3239_s26 + $0x18] sm:$0xff] %v2575_v24   ;;  %v1336_v30 = vadd.f32 %v2935_v28, %v3218_v41  ;;  %v689_v31 = vadd.f32 %v3213_v40, %v688_v29  ;;  %v1327_v32 = vpop.f32.mrb[9].mxu1  ;;  %v2866_v33 = vpop.f32.mrb[10].mxu0 }
  0xf8   : > { %2749 = vst [vmem:[%s3239_s26 + $0x10] sm:$0xff] %v2570_v26   ;;  %v1328_v34 = vadd.f32 %v3218_v41, %v1327_v32  ;;  %v700_v35 = vadd.f32 %v2866_v33, %v3213_v40  ;;  %v2936_v36 = vpop.f32.mrb[10].mxu1  ;;  %v691_v37 = vpop.f32.mrb[11].mxu0 }
  0xf9   : > { %v1339_v38 = vadd.f32 %v2936_v36, %v3218_v41  ;;  %v692_v39 = vadd.f32 %v3213_v40, %v691_v37  ;;  %v1330_v42 = vpop.f32.mrb[11].mxu1  ;;  %v1560_v45 = vmax.f32 %v1336_v30, 0.0 }
  0xfa   : > { %v2425_v43 = vpack.c.bf16 %v700_v35, %v697_v27  ;;  %v1331_v44 = vadd.f32 %v3218_v41, %v1330_v42  ;;  %v1558_v48 = vmax.f32 %v1328_v34, 0.0 }
  0xfb   : > { %v1561_v46 = vmax.f32 %v1339_v38, 0.0  ;;  %v2420_v47 = vpack.c.bf16 %v692_v39, %v689_v31 }
  0xfc   : > { %2721 = vst [vmem:[%s3229_s23 + $0x28] sm:$0xff] %v2425_v43   ;;  %v1559_v49 = vmax.f32 %v1331_v44, 0.0 }
  0xfd   : > { %v2585_v50 = vpack.c.bf16 %v1561_v46, %v1560_v45  ;;  %2720 = vst [vmem:[%s3229_s23 + $0x20] sm:$0xff] %v2420_v47   ;;  %v2869_v51 = vpop.f32.mrb[12].mxu0 }
  0xfe   : > { %v2580_v52 = vpack.c.bf16 %v1559_v49, %v1558_v48  ;;  %v713_v53 = vadd.f32 %v2869_v51, %v3213_v40  ;;  %v2939_v54 = vpop.f32.mrb[12].mxu1  ;;  %v704_v55 = vpop.f32.mrb[13].mxu0 }
  0xff   : > { %2752 = vst [vmem:[%s3239_s26 + $0x28] sm:$0xff] %v2585_v50   ;;  %v1352_v56 = vadd.f32 %v2939_v54, %v3218_v41  ;;  %v705_v57 = vadd.f32 %v3213_v40, %v704_v55  ;;  %v1343_v58 = vpop.f32.mrb[13].mxu1  ;;  %v2870_v59 = vpop.f32.mrb[14].mxu0 }
 0x100   : > { %2751 = vst [vmem:[%s3239_s26 + $0x20] sm:$0xff] %v2580_v52   ;;  %v1344_v60 = vadd.f32 %v3218_v41, %v1343_v58  ;;  %v716_v61 = vadd.f32 %v2870_v59, %v3213_v40  ;;  %v2940_v62 = vpop.f32.mrb[14].mxu1  ;;  %v707_v63 = vpop.f32.mrb[15].mxu0 }
 0x101   : > { %v1355_v0 = vadd.f32 %v2940_v62, %v3218_v41  ;;  %v708_v1 = vadd.f32 %v3213_v40, %v707_v63  ;;  %v1346_v2 = vpop.f32.mrb[15].mxu1  ;;  %v1564_v5 = vmax.f32 %v1352_v56, 0.0 }
 0x102   : > { %v2435_v3 = vpack.c.bf16 %v716_v61, %v713_v53  ;;  %v1347_v4 = vadd.f32 %v3218_v41, %v1346_v2  ;;  %v1562_v8 = vmax.f32 %v1344_v60, 0.0 }
 0x103   : > { %v1565_v6 = vmax.f32 %v1355_v0, 0.0  ;;  %v2430_v7 = vpack.c.bf16 %v708_v1, %v705_v57 }
 0x104   : > { %2723 = vst [vmem:[%s3229_s23 + $0x38] sm:$0xff] %v2435_v3   ;;  %v1563_v9 = vmax.f32 %v1347_v4, 0.0 }
 0x105   : > { %v2595_v10 = vpack.c.bf16 %v1565_v6, %v1564_v5  ;;  %2722 = vst [vmem:[%s3229_s23 + $0x30] sm:$0xff] %v2430_v7   ;;  %v2873_v11 = vpop.f32.mrb[16].mxu0 }
 0x106   : > { %v2590_v12 = vpack.c.bf16 %v1563_v9, %v1562_v8  ;;  %v729_v13 = vadd.f32 %v2873_v11, %v3213_v40  ;;  %v2943_v14 = vpop.f32.mrb[16].mxu1  ;;  %v720_v15 = vpop.f32.mrb[17].mxu0 }
 0x107   : > { %2754 = vst [vmem:[%s3239_s26 + $0x38] sm:$0xff] %v2595_v10   ;;  %v1368_v16 = vadd.f32 %v2943_v14, %v3218_v41  ;;  %v721_v17 = vadd.f32 %v3213_v40, %v720_v15  ;;  %v1359_v18 = vpop.f32.mrb[17].mxu1  ;;  %v2874_v19 = vpop.f32.mrb[18].mxu0 }
 0x108   : > { %2753 = vst [vmem:[%s3239_s26 + $0x30] sm:$0xff] %v2590_v12   ;;  %v1360_v20 = vadd.f32 %v3218_v41, %v1359_v18  ;;  %v732_v21 = vadd.f32 %v2874_v19, %v3213_v40  ;;  %v2944_v22 = vpop.f32.mrb[18].mxu1  ;;  %v723_v23 = vpop.f32.mrb[19].mxu0 }
 0x109   : > { %v1371_v24 = vadd.f32 %v2944_v22, %v3218_v41  ;;  %v724_v25 = vadd.f32 %v3213_v40, %v723_v23  ;;  %v1362_v26 = vpop.f32.mrb[19].mxu1  ;;  %v1568_v29 = vmax.f32 %v1368_v16, 0.0 }
 0x10a   : > { %v2445_v27 = vpack.c.bf16 %v732_v21, %v729_v13  ;;  %v1363_v28 = vadd.f32 %v3218_v41, %v1362_v26  ;;  %v1566_v32 = vmax.f32 %v1360_v20, 0.0 }
 0x10b   : > { %v1569_v30 = vmax.f32 %v1371_v24, 0.0  ;;  %v2440_v31 = vpack.c.bf16 %v724_v25, %v721_v17 }
 0x10c   : > { %2725 = vst [vmem:[%s3229_s23 + $0x48] sm:$0xff] %v2445_v27   ;;  %v1567_v33 = vmax.f32 %v1363_v28, 0.0 }
 0x10d   : > { %v2605_v34 = vpack.c.bf16 %v1569_v30, %v1568_v29  ;;  %2724 = vst [vmem:[%s3229_s23 + $0x40] sm:$0xff] %v2440_v31   ;;  %v2877_v35 = vpop.f32.mrb[20].mxu0 }
 0x10e   : > { %v2600_v36 = vpack.c.bf16 %v1567_v33, %v1566_v32  ;;  %v745_v37 = vadd.f32 %v2877_v35, %v3213_v40  ;;  %v2947_v38 = vpop.f32.mrb[20].mxu1  ;;  %v736_v39 = vpop.f32.mrb[21].mxu0 }
 0x10f   : > { %2756 = vst [vmem:[%s3239_s26 + $0x48] sm:$0xff] %v2605_v34   ;;  %v1384_v42 = vadd.f32 %v2947_v38, %v3218_v41  ;;  %v737_v43 = vadd.f32 %v3213_v40, %v736_v39  ;;  %v1375_v44 = vpop.f32.mrb[21].mxu1  ;;  %v2878_v45 = vpop.f32.mrb[22].mxu0 }
 0x110   : > { %2755 = vst [vmem:[%s3239_s26 + $0x40] sm:$0xff] %v2600_v36   ;;  %v1376_v46 = vadd.f32 %v3218_v41, %v1375_v44  ;;  %v748_v47 = vadd.f32 %v2878_v45, %v3213_v40  ;;  %v2948_v48 = vpop.f32.mrb[22].mxu1  ;;  %v739_v49 = vpop.f32.mrb[23].mxu0 }
 0x111   : > { %v1387_v50 = vadd.f32 %v2948_v48, %v3218_v41  ;;  %v740_v51 = vadd.f32 %v3213_v40, %v739_v49  ;;  %v1378_v52 = vpop.f32.mrb[23].mxu1  ;;  %v1572_v55 = vmax.f32 %v1384_v42, 0.0 }
 0x112   : > { %v2455_v53 = vpack.c.bf16 %v748_v47, %v745_v37  ;;  %v1379_v54 = vadd.f32 %v3218_v41, %v1378_v52  ;;  %v1570_v58 = vmax.f32 %v1376_v46, 0.0 }
 0x113   : > { %v1573_v56 = vmax.f32 %v1387_v50, 0.0  ;;  %v2450_v57 = vpack.c.bf16 %v740_v51, %v737_v43 }
 0x114   : > { %2727 = vst [vmem:[%s3229_s23 + $0x58] sm:$0xff] %v2455_v53   ;;  %v1571_v59 = vmax.f32 %v1379_v54, 0.0 }
 0x115   : > { %v2615_v60 = vpack.c.bf16 %v1573_v56, %v1572_v55  ;;  %2726 = vst [vmem:[%s3229_s23 + $0x50] sm:$0xff] %v2450_v57   ;;  %v2881_v61 = vpop.f32.mrb[24].mxu0 }
 0x116   : > { %v2610_v62 = vpack.c.bf16 %v1571_v59, %v1570_v58  ;;  %v761_v63 = vadd.f32 %v2881_v61, %v3213_v40  ;;  %v2951_v0 = vpop.f32.mrb[24].mxu1  ;;  %v752_v1 = vpop.f32.mrb[25].mxu0 }
 0x117   : > { %2758 = vst [vmem:[%s3239_s26 + $0x58] sm:$0xff] %v2615_v60   ;;  %v1400_v2 = vadd.f32 %v2951_v0, %v3218_v41  ;;  %v753_v3 = vadd.f32 %v3213_v40, %v752_v1  ;;  %v1391_v4 = vpop.f32.mrb[25].mxu1  ;;  %v2882_v5 = vpop.f32.mrb[26].mxu0 }
 0x118   : > { %2757 = vst [vmem:[%s3239_s26 + $0x50] sm:$0xff] %v2610_v62   ;;  %v1392_v6 = vadd.f32 %v3218_v41, %v1391_v4  ;;  %v764_v7 = vadd.f32 %v2882_v5, %v3213_v40  ;;  %v2952_v8 = vpop.f32.mrb[26].mxu1  ;;  %v755_v9 = vpop.f32.mrb[27].mxu0 }
 0x119   : > { %v1403_v10 = vadd.f32 %v2952_v8, %v3218_v41  ;;  %v756_v11 = vadd.f32 %v3213_v40, %v755_v9  ;;  %v1394_v12 = vpop.f32.mrb[27].mxu1  ;;  %v1576_v15 = vmax.f32 %v1400_v2, 0.0 }
 0x11a   : > { %v2465_v13 = vpack.c.bf16 %v764_v7, %v761_v63  ;;  %v1395_v14 = vadd.f32 %v3218_v41, %v1394_v12  ;;  %v1574_v18 = vmax.f32 %v1392_v6, 0.0 }
 0x11b   : > { %v1577_v16 = vmax.f32 %v1403_v10, 0.0  ;;  %v2460_v17 = vpack.c.bf16 %v756_v11, %v753_v3 }
 0x11c   : > { %2729 = vst [vmem:[%s3229_s23 + $0x68] sm:$0xff] %v2465_v13   ;;  %v1575_v19 = vmax.f32 %v1395_v14, 0.0 }
 0x11d   : > { %v2625_v20 = vpack.c.bf16 %v1577_v16, %v1576_v15  ;;  %2728 = vst [vmem:[%s3229_s23 + $0x60] sm:$0xff] %v2460_v17   ;;  %v2885_v21 = vpop.f32.mrb[28].mxu0 }
 0x11e   : > { %v2620_v22 = vpack.c.bf16 %v1575_v19, %v1574_v18  ;;  %v777_v23 = vadd.f32 %v2885_v21, %v3213_v40  ;;  %v2955_v24 = vpop.f32.mrb[28].mxu1  ;;  %v768_v25 = vpop.f32.mrb[29].mxu0 }
 0x11f   : > { %2760 = vst [vmem:[%s3239_s26 + $0x68] sm:$0xff] %v2625_v20   ;;  %v1416_v26 = vadd.f32 %v2955_v24, %v3218_v41  ;;  %v769_v27 = vadd.f32 %v3213_v40, %v768_v25  ;;  %v1407_v28 = vpop.f32.mrb[29].mxu1  ;;  %v2886_v29 = vpop.f32.mrb[30].mxu0 }
 0x120   : > { %2759 = vst [vmem:[%s3239_s26 + $0x60] sm:$0xff] %v2620_v22   ;;  %v1408_v30 = vadd.f32 %v3218_v41, %v1407_v28  ;;  %v780_v31 = vadd.f32 %v2886_v29, %v3213_v40  ;;  %v2956_v32 = vpop.f32.mrb[30].mxu1  ;;  %v771_v33 = vpop.f32.mrb[31].mxu0 }
 0x121   : > { %v1419_v34 = vadd.f32 %v2956_v32, %v3218_v41  ;;  %v772_v35 = vadd.f32 %v3213_v40, %v771_v33  ;;  %v1410_v36 = vpop.f32.mrb[31].mxu1  ;;  %v1580_v39 = vmax.f32 %v1416_v26, 0.0 }
 0x122   : > { %v2475_v37 = vpack.c.bf16 %v780_v31, %v777_v23  ;;  %v1411_v38 = vadd.f32 %v3218_v41, %v1410_v36  ;;  %v1578_v44 = vmax.f32 %v1408_v30, 0.0 }
 0x123   : > { %v1581_v42 = vmax.f32 %v1419_v34, 0.0  ;;  %v2470_v43 = vpack.c.bf16 %v772_v35, %v769_v27 }
 0x124   : > { %2731 = vst [vmem:[%s3229_s23 + $0x78] sm:$0xff] %v2475_v37   ;;  %v1579_v45 = vmax.f32 %v1411_v38, 0.0 }
 0x125   : > { %v2635_v46 = vpack.c.bf16 %v1581_v42, %v1580_v39  ;;  %2730 = vst [vmem:[%s3229_s23 + $0x70] sm:$0xff] %v2470_v43   ;;  %v2889_v47 = vpop.f32.mrb[32].mxu0 }
 0x126   : > { %v2630_v48 = vpack.c.bf16 %v1579_v45, %v1578_v44  ;;  %v793_v49 = vadd.f32 %v2889_v47, %v3213_v40  ;;  %v2959_v50 = vpop.f32.mrb[32].mxu1  ;;  %v784_v51 = vpop.f32.mrb[33].mxu0 }
 0x127   : > { %2762 = vst [vmem:[%s3239_s26 + $0x78] sm:$0xff] %v2635_v46   ;;  %v1432_v52 = vadd.f32 %v2959_v50, %v3218_v41  ;;  %v785_v53 = vadd.f32 %v3213_v40, %v784_v51  ;;  %v1423_v54 = vpop.f32.mrb[33].mxu1  ;;  %v2890_v55 = vpop.f32.mrb[34].mxu0 }
 0x128   : > { %2761 = vst [vmem:[%s3239_s26 + $0x70] sm:$0xff] %v2630_v48   ;;  %v1424_v56 = vadd.f32 %v3218_v41, %v1423_v54  ;;  %v796_v57 = vadd.f32 %v2890_v55, %v3213_v40  ;;  %v2960_v58 = vpop.f32.mrb[34].mxu1  ;;  %v787_v59 = vpop.f32.mrb[35].mxu0 }
 0x129   : > { %v1435_v60 = vadd.f32 %v2960_v58, %v3218_v41  ;;  %v788_v61 = vadd.f32 %v3213_v40, %v787_v59  ;;  %v1426_v62 = vpop.f32.mrb[35].mxu1  ;;  %v1584_v1 = vmax.f32 %v1432_v52, 0.0 }
 0x12a   : > { %v2485_v63 = vpack.c.bf16 %v796_v57, %v793_v49  ;;  %v1427_v0 = vadd.f32 %v3218_v41, %v1426_v62  ;;  %v1582_v4 = vmax.f32 %v1424_v56, 0.0 }
 0x12b   : > { %v1585_v2 = vmax.f32 %v1435_v60, 0.0  ;;  %v2480_v3 = vpack.c.bf16 %v788_v61, %v785_v53 }
 0x12c   : > { %2733 = vst [vmem:[%s3229_s23 + $0x88] sm:$0xff] %v2485_v63   ;;  %v1583_v5 = vmax.f32 %v1427_v0, 0.0 }
 0x12d   : > { %v2645_v6 = vpack.c.bf16 %v1585_v2, %v1584_v1  ;;  %2732 = vst [vmem:[%s3229_s23 + $0x80] sm:$0xff] %v2480_v3   ;;  %v2893_v7 = vpop.f32.mrb[36].mxu0 }
 0x12e   : > { %v2640_v8 = vpack.c.bf16 %v1583_v5, %v1582_v4  ;;  %v809_v9 = vadd.f32 %v2893_v7, %v3213_v40  ;;  %v2963_v10 = vpop.f32.mrb[36].mxu1  ;;  %v800_v11 = vpop.f32.mrb[37].mxu0 }
 0x12f   : > { %2764 = vst [vmem:[%s3239_s26 + $0x88] sm:$0xff] %v2645_v6   ;;  %v1448_v12 = vadd.f32 %v2963_v10, %v3218_v41  ;;  %v801_v13 = vadd.f32 %v3213_v40, %v800_v11  ;;  %v1439_v14 = vpop.f32.mrb[37].mxu1  ;;  %v2894_v15 = vpop.f32.mrb[38].mxu0 }
 0x130   : > { %2763 = vst [vmem:[%s3239_s26 + $0x80] sm:$0xff] %v2640_v8   ;;  %v1440_v16 = vadd.f32 %v3218_v41, %v1439_v14  ;;  %v812_v17 = vadd.f32 %v2894_v15, %v3213_v40  ;;  %v2964_v18 = vpop.f32.mrb[38].mxu1  ;;  %v803_v19 = vpop.f32.mrb[39].mxu0 }
 0x131   : > { %v1451_v20 = vadd.f32 %v2964_v18, %v3218_v41  ;;  %v804_v21 = vadd.f32 %v3213_v40, %v803_v19  ;;  %v1442_v22 = vpop.f32.mrb[39].mxu1  ;;  %v1588_v25 = vmax.f32 %v1448_v12, 0.0 }
 0x132   : > { %v2495_v23 = vpack.c.bf16 %v812_v17, %v809_v9  ;;  %v1443_v24 = vadd.f32 %v3218_v41, %v1442_v22  ;;  %v1586_v28 = vmax.f32 %v1440_v16, 0.0 }
 0x133   : > { %v1589_v26 = vmax.f32 %v1451_v20, 0.0  ;;  %v2490_v27 = vpack.c.bf16 %v804_v21, %v801_v13 }
 0x134   : > { %2735 = vst [vmem:[%s3229_s23 + $0x98] sm:$0xff] %v2495_v23   ;;  %v1587_v29 = vmax.f32 %v1443_v24, 0.0 }
 0x135   : > { %v2655_v30 = vpack.c.bf16 %v1589_v26, %v1588_v25  ;;  %2734 = vst [vmem:[%s3229_s23 + $0x90] sm:$0xff] %v2490_v27   ;;  %v2897_v31 = vpop.f32.mrb[40].mxu0 }
 0x136   : > { %v2650_v32 = vpack.c.bf16 %v1587_v29, %v1586_v28  ;;  %v825_v33 = vadd.f32 %v2897_v31, %v3213_v40  ;;  %v2967_v34 = vpop.f32.mrb[40].mxu1  ;;  %v816_v35 = vpop.f32.mrb[41].mxu0 }
 0x137   : > { %2766 = vst [vmem:[%s3239_s26 + $0x98] sm:$0xff] %v2655_v30   ;;  %v1464_v36 = vadd.f32 %v2967_v34, %v3218_v41  ;;  %v817_v37 = vadd.f32 %v3213_v40, %v816_v35  ;;  %v1455_v38 = vpop.f32.mrb[41].mxu1  ;;  %v2898_v39 = vpop.f32.mrb[42].mxu0 }
 0x138   : > { %2765 = vst [vmem:[%s3239_s26 + $0x90] sm:$0xff] %v2650_v32   ;;  %v1456_v42 = vadd.f32 %v3218_v41, %v1455_v38  ;;  %v828_v43 = vadd.f32 %v2898_v39, %v3213_v40  ;;  %v2968_v44 = vpop.f32.mrb[42].mxu1  ;;  %v819_v45 = vpop.f32.mrb[43].mxu0 }
 0x139   : > { %v1467_v46 = vadd.f32 %v2968_v44, %v3218_v41  ;;  %v820_v47 = vadd.f32 %v3213_v40, %v819_v45  ;;  %v1458_v48 = vpop.f32.mrb[43].mxu1  ;;  %v1592_v51 = vmax.f32 %v1464_v36, 0.0 }
 0x13a   : > { %v2505_v49 = vpack.c.bf16 %v828_v43, %v825_v33  ;;  %v1459_v50 = vadd.f32 %v3218_v41, %v1458_v48  ;;  %v1590_v54 = vmax.f32 %v1456_v42, 0.0 }
 0x13b   : > { %v1593_v52 = vmax.f32 %v1467_v46, 0.0  ;;  %v2500_v53 = vpack.c.bf16 %v820_v47, %v817_v37 }
 0x13c   : > { %2737 = vst [vmem:[%s3229_s23 + $0xa8] sm:$0xff] %v2505_v49   ;;  %v1591_v55 = vmax.f32 %v1459_v50, 0.0 }
 0x13d   : > { %v2665_v56 = vpack.c.bf16 %v1593_v52, %v1592_v51  ;;  %2736 = vst [vmem:[%s3229_s23 + $0xa0] sm:$0xff] %v2500_v53   ;;  %v2901_v57 = vpop.f32.mrb[44].mxu0 }
 0x13e   : > { %v2660_v58 = vpack.c.bf16 %v1591_v55, %v1590_v54  ;;  %v841_v59 = vadd.f32 %v2901_v57, %v3213_v40  ;;  %v2971_v60 = vpop.f32.mrb[44].mxu1  ;;  %v832_v61 = vpop.f32.mrb[45].mxu0 }
 0x13f   : > { %2768 = vst [vmem:[%s3239_s26 + $0xa8] sm:$0xff] %v2665_v56   ;;  %v1480_v62 = vadd.f32 %v2971_v60, %v3218_v41  ;;  %v833_v63 = vadd.f32 %v3213_v40, %v832_v61  ;;  %v1471_v0 = vpop.f32.mrb[45].mxu1  ;;  %v2902_v1 = vpop.f32.mrb[46].mxu0 }
 0x140   : > { %2767 = vst [vmem:[%s3239_s26 + $0xa0] sm:$0xff] %v2660_v58   ;;  %v1472_v2 = vadd.f32 %v3218_v41, %v1471_v0  ;;  %v844_v3 = vadd.f32 %v2902_v1, %v3213_v40  ;;  %v2972_v4 = vpop.f32.mrb[46].mxu1  ;;  %v835_v5 = vpop.f32.mrb[47].mxu0 }
 0x141   : > { %v1483_v6 = vadd.f32 %v2972_v4, %v3218_v41  ;;  %v836_v7 = vadd.f32 %v3213_v40, %v835_v5  ;;  %v1474_v8 = vpop.f32.mrb[47].mxu1  ;;  %v1596_v11 = vmax.f32 %v1480_v62, 0.0 }
 0x142   : > { %v2515_v9 = vpack.c.bf16 %v844_v3, %v841_v59  ;;  %v1475_v10 = vadd.f32 %v3218_v41, %v1474_v8  ;;  %v1594_v14 = vmax.f32 %v1472_v2, 0.0 }
 0x143   : > { %v1597_v12 = vmax.f32 %v1483_v6, 0.0  ;;  %v2510_v13 = vpack.c.bf16 %v836_v7, %v833_v63 }
 0x144   : > { %2739 = vst [vmem:[%s3229_s23 + $0xb8] sm:$0xff] %v2515_v9   ;;  %v1595_v15 = vmax.f32 %v1475_v10, 0.0 }
 0x145   : > { %v2675_v16 = vpack.c.bf16 %v1597_v12, %v1596_v11  ;;  %2738 = vst [vmem:[%s3229_s23 + $0xb0] sm:$0xff] %v2510_v13   ;;  %v2905_v17 = vpop.f32.mrb[48].mxu0 }
 0x146   : > { %v2670_v18 = vpack.c.bf16 %v1595_v15, %v1594_v14  ;;  %v857_v19 = vadd.f32 %v2905_v17, %v3213_v40  ;;  %v2975_v20 = vpop.f32.mrb[48].mxu1  ;;  %v848_v21 = vpop.f32.mrb[49].mxu0 }
 0x147   : > { %2770 = vst [vmem:[%s3239_s26 + $0xb8] sm:$0xff] %v2675_v16   ;;  %v1496_v22 = vadd.f32 %v2975_v20, %v3218_v41  ;;  %v849_v23 = vadd.f32 %v3213_v40, %v848_v21  ;;  %v1487_v24 = vpop.f32.mrb[49].mxu1  ;;  %v2906_v25 = vpop.f32.mrb[50].mxu0 }
 0x148   : > { %2769 = vst [vmem:[%s3239_s26 + $0xb0] sm:$0xff] %v2670_v18   ;;  %v1488_v26 = vadd.f32 %v3218_v41, %v1487_v24  ;;  %v860_v27 = vadd.f32 %v2906_v25, %v3213_v40  ;;  %v2976_v28 = vpop.f32.mrb[50].mxu1  ;;  %v851_v29 = vpop.f32.mrb[51].mxu0 }
 0x149   : > { %v1499_v30 = vadd.f32 %v2976_v28, %v3218_v41  ;;  %v852_v31 = vadd.f32 %v3213_v40, %v851_v29  ;;  %v1490_v32 = vpop.f32.mrb[51].mxu1  ;;  %v1600_v35 = vmax.f32 %v1496_v22, 0.0 }
 0x14a   : > { %v2525_v33 = vpack.c.bf16 %v860_v27, %v857_v19  ;;  %v1491_v34 = vadd.f32 %v3218_v41, %v1490_v32  ;;  %v1598_v38 = vmax.f32 %v1488_v26, 0.0 }
 0x14b   : > { %v1601_v36 = vmax.f32 %v1499_v30, 0.0  ;;  %v2520_v37 = vpack.c.bf16 %v852_v31, %v849_v23 }
 0x14c   : > { %2741 = vst [vmem:[%s3229_s23 + $0xc8] sm:$0xff] %v2525_v33   ;;  %v1599_v39 = vmax.f32 %v1491_v34, 0.0 }
 0x14d   : > { %v2685_v42 = vpack.c.bf16 %v1601_v36, %v1600_v35  ;;  %2740 = vst [vmem:[%s3229_s23 + $0xc0] sm:$0xff] %v2520_v37   ;;  %v2909_v43 = vpop.f32.mrb[52].mxu0 }
 0x14e   : > { %v2680_v44 = vpack.c.bf16 %v1599_v39, %v1598_v38  ;;  %v873_v45 = vadd.f32 %v2909_v43, %v3213_v40  ;;  %v2979_v46 = vpop.f32.mrb[52].mxu1  ;;  %v864_v47 = vpop.f32.mrb[53].mxu0 }
 0x14f   : > { %2772 = vst [vmem:[%s3239_s26 + $0xc8] sm:$0xff] %v2685_v42   ;;  %v1512_v48 = vadd.f32 %v2979_v46, %v3218_v41  ;;  %v865_v49 = vadd.f32 %v3213_v40, %v864_v47  ;;  %v1503_v50 = vpop.f32.mrb[53].mxu1  ;;  %v2910_v51 = vpop.f32.mrb[54].mxu0 }
 0x150   : > { %2771 = vst [vmem:[%s3239_s26 + $0xc0] sm:$0xff] %v2680_v44   ;;  %v1504_v52 = vadd.f32 %v3218_v41, %v1503_v50  ;;  %v876_v53 = vadd.f32 %v2910_v51, %v3213_v40  ;;  %v2980_v54 = vpop.f32.mrb[54].mxu1  ;;  %v867_v55 = vpop.f32.mrb[55].mxu0 }
 0x151   : > { %v1515_v56 = vadd.f32 %v2980_v54, %v3218_v41  ;;  %v868_v57 = vadd.f32 %v3213_v40, %v867_v55  ;;  %v1506_v58 = vpop.f32.mrb[55].mxu1  ;;  %v1604_v61 = vmax.f32 %v1512_v48, 0.0 }
 0x152   : > { %v2535_v59 = vpack.c.bf16 %v876_v53, %v873_v45  ;;  %v1507_v60 = vadd.f32 %v3218_v41, %v1506_v58  ;;  %v1602_v0 = vmax.f32 %v1504_v52, 0.0 }
 0x153   : > { %v1605_v62 = vmax.f32 %v1515_v56, 0.0  ;;  %v2530_v63 = vpack.c.bf16 %v868_v57, %v865_v49 }
 0x154   : > { %2743 = vst [vmem:[%s3229_s23 + $0xd8] sm:$0xff] %v2535_v59   ;;  %v1603_v1 = vmax.f32 %v1507_v60, 0.0 }
 0x155   : > { %v2695_v2 = vpack.c.bf16 %v1605_v62, %v1604_v61  ;;  %2742 = vst [vmem:[%s3229_s23 + $0xd0] sm:$0xff] %v2530_v63   ;;  %v2913_v3 = vpop.f32.mrb[56].mxu0 }
 0x156   : > { %v2690_v4 = vpack.c.bf16 %v1603_v1, %v1602_v0  ;;  %v889_v5 = vadd.f32 %v2913_v3, %v3213_v40  ;;  %v2983_v6 = vpop.f32.mrb[56].mxu1  ;;  %v880_v7 = vpop.f32.mrb[57].mxu0 }
 0x157   : > { %2774 = vst [vmem:[%s3239_s26 + $0xd8] sm:$0xff] %v2695_v2   ;;  %v1528_v8 = vadd.f32 %v2983_v6, %v3218_v41  ;;  %v881_v9 = vadd.f32 %v3213_v40, %v880_v7  ;;  %v1519_v10 = vpop.f32.mrb[57].mxu1  ;;  %v2914_v11 = vpop.f32.mrb[58].mxu0 }
 0x158   : > { %2773 = vst [vmem:[%s3239_s26 + $0xd0] sm:$0xff] %v2690_v4   ;;  %v1520_v12 = vadd.f32 %v3218_v41, %v1519_v10  ;;  %v892_v13 = vadd.f32 %v2914_v11, %v3213_v40  ;;  %v2984_v14 = vpop.f32.mrb[58].mxu1  ;;  %v883_v15 = vpop.f32.mrb[59].mxu0 }
 0x159   : > { %v1531_v16 = vadd.f32 %v2984_v14, %v3218_v41  ;;  %v884_v17 = vadd.f32 %v3213_v40, %v883_v15  ;;  %v1522_v18 = vpop.f32.mrb[59].mxu1  ;;  %v1608_v21 = vmax.f32 %v1528_v8, 0.0 }
 0x15a   : > { %v2545_v19 = vpack.c.bf16 %v892_v13, %v889_v5  ;;  %v1523_v20 = vadd.f32 %v3218_v41, %v1522_v18  ;;  %v1606_v24 = vmax.f32 %v1520_v12, 0.0 }
 0x15b   : > { %v1609_v22 = vmax.f32 %v1531_v16, 0.0  ;;  %v2540_v23 = vpack.c.bf16 %v884_v17, %v881_v9 }
 0x15c   : > { %2745 = vst [vmem:[%s3229_s23 + $0xe8] sm:$0xff] %v2545_v19   ;;  %v1607_v25 = vmax.f32 %v1523_v20, 0.0 }
 0x15d   : > { %v2705_v26 = vpack.c.bf16 %v1609_v22, %v1608_v21  ;;  %2744 = vst [vmem:[%s3229_s23 + $0xe0] sm:$0xff] %v2540_v23   ;;  %v2917_v27 = vpop.f32.mrb[60].mxu0 }
 0x15e   : > { %v2700_v28 = vpack.c.bf16 %v1607_v25, %v1606_v24  ;;  %v905_v29 = vadd.f32 %v2917_v27, %v3213_v40  ;;  %v2987_v30 = vpop.f32.mrb[60].mxu1  ;;  %v896_v31 = vpop.f32.mrb[61].mxu0 }
 0x15f   : > { %2776 = vst [vmem:[%s3239_s26 + $0xe8] sm:$0xff] %v2705_v26   ;;  %v1544_v32 = vadd.f32 %v2987_v30, %v3218_v41  ;;  %v897_v33 = vadd.f32 %v3213_v40, %v896_v31  ;;  %v1535_v34 = vpop.f32.mrb[61].mxu1  ;;  %v2918_v35 = vpop.f32.mrb[62].mxu0 }
 0x160   : > { %2775 = vst [vmem:[%s3239_s26 + $0xe0] sm:$0xff] %v2700_v28   ;;  %v1536_v36 = vadd.f32 %v3218_v41, %v1535_v34  ;;  %v908_v37 = vadd.f32 %v2918_v35, %v3213_v40  ;;  %v2988_v38 = vpop.f32.mrb[62].mxu1  ;;  %v899_v39 = vpop.f32.mrb[63].mxu0 }
 0x161   : > { %v1547_v42 = vadd.f32 %v2988_v38, %v3218_v41  ;;  %v900_v43 = vadd.f32 %v3213_v40, %v899_v39  ;;  %v1538_v44 = vpop.f32.mrb[63].mxu1  ;;  %v1612_v47 = vmax.f32 %v1544_v32, 0.0 }
 0x162   : > { %v2555_v45 = vpack.c.bf16 %v908_v37, %v905_v29  ;;  %v1539_v46 = vadd.f32 %v3218_v41, %v1538_v44  ;;  %v1610_v50 = vmax.f32 %v1536_v36, 0.0 }
 0x163   : > { %v1613_v48 = vmax.f32 %v1547_v42, 0.0  ;;  %v2550_v49 = vpack.c.bf16 %v900_v43, %v897_v33 }
 0x164   : > { %2747 = vst [vmem:[%s3229_s23 + $0xf8] sm:$0xff] %v2555_v45   ;;  %v1611_v51 = vmax.f32 %v1539_v46, 0.0 }
 0x165   : > { %v2715_v52 = vpack.c.bf16 %v1613_v48, %v1612_v47  ;;  %2746 = vst [vmem:[%s3229_s23 + $0xf0] sm:$0xff] %v2550_v49  }
 0x166   : > { %v2710_v53 = vpack.c.bf16 %v1611_v51, %v1610_v50 }
 0x167   : > { %2778 = vst [vmem:[%s3239_s26 + $0xf8] sm:$0xff] %v2715_v52  }
 0x168   : > { %2777 = vst [vmem:[%s3239_s26 + $0xf0] sm:$0xff] %v2710_v53  }
 0x169 PF: > { %s17_s21 = sadd.s32 1, %s3043_s21  }
 0x16a   : > { %p14_p4 = scmp.ge.s32.totalorder %s17_s21, 6  }
 0x16c   :  { %16 = sbr.rel (!%p14_p4) target bundleno = 1 (0x1), region = 82 }

// kernel: a_call__.3
= control target key start
LH: loop header
LB: loop body
LE: loop exit
PB: predicated region body
PF: predicated region fallthrough
CT: control target
= control target key end

     0   :  { %s1712_s15 = smov 0   ;;  %s1990_s0 = inlined_call_operand.vmem [shape: bf16[2048,72], index: 0, kind: input, shape index: {}]   ;;  %s1991_s1 = inlined_call_operand.vmem [shape: bf16[72,128], index: 1, kind: input, shape index: {}]   ;;  %s1992_s2 = inlined_call_operand.vmem [shape: f32[1,128], index: 2, kind: input, shape index: {}]   ;;  %s1993_s3 = inlined_call_operand.vmem [shape: bf16[2048,128], index: 3, kind: input, shape index: {}]   ;;  %s1994_s4 = inlined_call_operand.vmem [shape: f32[2048,128], index: 4, kind: output, shape index: {}]  }
   0x1 LB: > { %s1269_s16 = sadd.s32 4294967295, %s1685_s15   ;;  %p1273_p0 = scmp.ge.s32.totalorder %s1685_s15, 1  ;;  %s1685_s15 = sphi %s1712_s15, %s14_s15  }
   0x2   : > { %p174_p1 = scmp.lt.s32.totalorder %s1685_s15, 5 }
   0x4   : > { %p175_p2 = pnand %p1273_p0, %p174_p1 }
   0x5   : > { %v1642_v0 = vld [vmem:[%s1991_s1] sm:$0xff] (!%p175_p2)   ;;  %v1643_v1 = vld [vmem:[%s1991_s1 + $0x8] sm:$0xff] (!%p175_p2)   ;;  %s1274_s21 = sshll.u32 (!%p175_p2), %s1269_s16, 6  ;;  %v1644_v2 = vld [vmem:[%s1991_s1 + $0x10] sm:$0xff] (!%p175_p2)   ;;  %vm491_vm0 = vcmask (!%p175_p2), 588800   ;;  %vm588_vm1 = vcmask (!%p175_p2), 1043456  }
   0x6   : > { %178 = sbr.rel (%p175_p2) target bundleno = 304 (0x130), region = 36  ;;  %1548 = vmatprep.subr.bf16.mxu0 (!%p175_p2), %v1642_v0  ;;  %1622 = vmatprep.subr.bf16.mxu1 (!%p175_p2), %v1642_v0  ;;  %p206_p3 = scmp.lt.s32.totalorder (!%p175_p2), %s1274_s21, 255  ;;  %v1645_v3 = vld [vmem:[%s1991_s1 + $0x18] sm:$0xff] (!%p175_p2)   ;;  %v1646_v6 = vld [vmem:[%s1991_s1 + $0x20] ss:$0 sps:$4 sm:$0xff] (!%p175_p2)  }
   0x7   : > { %1549 = vmatpush3.bf16.msra.mxu0 (!%p175_p2), %v1642_v0  ;;  %1627 = vmatpush3.bf16.msra.mxu1 (!%p175_p2), %v1642_v0  ;;  %v590_v7 = vsel (!%p175_p2), %vm588_vm1, %v1646_v6, 0  ;;  %v1823_v42 = vld [vmem:[%s1992_s2] ss:$0 sm:$0xff] (!%p175_p2) }
   0x8   : > { %1550 = vmatprep.subr.bf16.mxu0 (!%p175_p2), %v1643_v1  ;;  %1623 = vmatprep.subr.bf16.mxu1 (!%p175_p2), %v1643_v1 }
   0xb   : > { %1551 = vmatpush3.bf16.msra.mxu0 (!%p175_p2), %v1643_v1  ;;  %1628 = vmatpush3.bf16.msra.mxu1 (!%p175_p2), %v1643_v1 }
   0xc   : > { %1552 = vmatprep.subr.bf16.mxu0 (!%p175_p2), %v1644_v2  ;;  %1624 = vmatprep.subr.bf16.mxu1 (!%p175_p2), %v1644_v2 }
   0xd   : > { %s1996_s21 = smov (!%p206_p3, %s1274_s21), 255 }
   0xe   : > { %s1275_s24 = sshll.u32 %s1996_s21, 2  ;;  %s1279_s11 = sshll.u32 %s1996_s21, 3 }
   0xf   : > { %s1740_s29 = scalar_lea.vmem %s1990_s0, %s1275_s24  ;;  %1553 = vmatpush3.bf16.msra.mxu0 %v1644_v2  ;;  %1629 = vmatpush3.bf16.msra.mxu1 %v1644_v2  ;;  %s1814_s8 = scalar_lea.vmem %s1993_s3, %s1275_s24 }
  0x10   : > { %v1647_v4 = vld [vmem:[%s1740_s29] sm:$0xff]   ;;  %1554 = vmatprep.subr.bf16.mxu0 %v1645_v3  ;;  %1625 = vmatprep.subr.bf16.mxu1 %v1645_v3  ;;  %v1649_v8 = vld [vmem:[%s1740_s29 + $0x8] sm:$0xff]   ;;  %v1651_v10 = vld [vmem:[%s1740_s29 + $0x10] sm:$0xff]   ;;  %s1835_s14 = scalar_lea.vmem %s1994_s4, %s1279_s11 }
  0x11   : > { %v1648_v5 = vld [vmem:[%s1740_s29 + $0x80] sm:$0xff]   ;;  %1558 = vmatprep.mubr.msk.bf16.mxu0 %vm491_vm0, %v1647_v4  ;;  %v1650_v9 = vld [vmem:[%s1740_s29 + $0x88] sm:$0xff]   ;;  %v1652_v11 = vld [vmem:[%s1740_s29 + $0x90] sm:$0xff]  }
  0x12   : > { %1590 = vmatprep.mubr.msk.bf16.mxu1 %vm491_vm0, %v1648_v5  ;;  %v1653_v12 = vld [vmem:[%s1740_s29 + $0x18] sm:$0xff]   ;;  %v1655_v14 = vld [vmem:[%s1740_s29 + $0x20] sm:$0xff]   ;;  %v1657_v16 = vld [vmem:[%s1740_s29 + $0x28] sm:$0xff]  }
  0x13   : > { %1555 = vmatpush3.bf16.msra.mxu0 %v1645_v3  ;;  %1630 = vmatpush3.bf16.msra.mxu1 %v1645_v3  ;;  %v1654_v13 = vld [vmem:[%s1740_s29 + $0x98] sm:$0xff]   ;;  %v1656_v15 = vld [vmem:[%s1740_s29 + $0xa0] sm:$0xff]   ;;  %v1658_v17 = vld [vmem:[%s1740_s29 + $0xa8] sm:$0xff]  }
  0x14   : > { %1632 = vmatprep.subr.msk.bf16.mxu0 %vm588_vm1, %v1646_v6  ;;  %1633 = vmatprep.subr.msk.bf16.mxu1 %vm588_vm1, %v1646_v6  ;;  %v1659_v18 = vld [vmem:[%s1740_s29 + $0x30] sm:$0xff]   ;;  %v1661_v20 = vld [vmem:[%s1740_s29 + $0x38] sm:$0xff]   ;;  %v1663_v22 = vld [vmem:[%s1740_s29 + $0x40] sm:$0xff]  }
  0x15   : > { %v1660_v19 = vld [vmem:[%s1740_s29 + $0xb0] sm:$0xff]   ;;  %v1662_v21 = vld [vmem:[%s1740_s29 + $0xb8] sm:$0xff]   ;;  %v1664_v23 = vld [vmem:[%s1740_s29 + $0xc0] sm:$0xff]  }
  0x16   : > { %v1665_v24 = vld [vmem:[%s1740_s29 + $0x48] sm:$0xff]   ;;  %v1667_v26 = vld [vmem:[%s1740_s29 + $0x50] sm:$0xff]   ;;  %v1669_v28 = vld [vmem:[%s1740_s29 + $0x58] sm:$0xff]  }
  0x17   : > { %1557 = vmatpush3.bf16.msra.mxu0 %v590_v7  ;;  %1631 = vmatpush3.bf16.msra.mxu1 %v590_v7  ;;  %v1666_v25 = vld [vmem:[%s1740_s29 + $0xc8] sm:$0xff]   ;;  %v1668_v27 = vld [vmem:[%s1740_s29 + $0xd0] sm:$0xff]   ;;  %v1670_v29 = vld [vmem:[%s1740_s29 + $0xd8] sm:$0xff]  }
  0x18   : > { %v1671_v30 = vld [vmem:[%s1740_s29 + $0x60] sm:$0xff]   ;;  %v1673_v32 = vld [vmem:[%s1740_s29 + $0x68] sm:$0xff]   ;;  %v1675_v34 = vld [vmem:[%s1740_s29 + $0x70] sm:$0xff]  }
  0x19   : > { %v1672_v31 = vld [vmem:[%s1740_s29 + $0xe0] sm:$0xff]   ;;  %v1674_v33 = vld [vmem:[%s1740_s29 + $0xe8] sm:$0xff]   ;;  %v1676_v35 = vld [vmem:[%s1740_s29 + $0xf0] sm:$0xff]  }
  0x1a   : > { %1559 = vmatmul.mubr.msk.bf16.vlgmr.msra.gmra.mrb[0].mxu0 %vm491_vm0, %v1649_v8  ;;  %1591 = vmatmul.mubr.msk.bf16.vlgmr.msra.gmra.mrb[0].mxu1 %vm491_vm0, %v1650_v9  ;;  %v1677_v36 = vld [vmem:[%s1740_s29 + $0x78] sm:$0xff]   ;;  %v1480_v38 = vld [vmem:[%s1814_s8 + $0x8] sm:$0xff]   ;;  %v1353_v40 = vld [vmem:[%s1814_s8] sm:$0xff]  }
  0x1b   : > { %1562 = vmatprep.mubr.msk.bf16.mxu0 %vm491_vm0, %v1651_v10  ;;  %1594 = vmatprep.mubr.msk.bf16.mxu1 %vm491_vm0, %v1652_v11  ;;  %v1678_v37 = vld [vmem:[%s1740_s29 + $0xf8] sm:$0xff]   ;;  %v1496_v39 = vld [vmem:[%s1814_s8 + $0x88] sm:$0xff]   ;;  %v1495_v41 = vld [vmem:[%s1814_s8 + $0x80] sm:$0xff]   ;;  %v1358_v43 = vunpack.c.l.bf16 %v1480_v38  ;;  %v1354_v47 = vunpack.c.l.bf16 %v1353_v40  ;;  %v1359_v53 = vunpack.c.h.bf16 %v1480_v38  ;;  %v1355_v59 = vunpack.c.h.bf16 %v1353_v40 }
  0x1c   : > { %v1422_v44 = vunpack.c.l.bf16 %v1496_v39  ;;  %v1418_v48 = vunpack.c.l.bf16 %v1495_v41  ;;  %v1423_v54 = vunpack.c.h.bf16 %v1496_v39  ;;  %v1419_v60 = vunpack.c.h.bf16 %v1495_v41  ;;  %v1482_v7 = vld [vmem:[%s1814_s8 + $0x18] sm:$0xff]  }
  0x1d   : > { %v1498_v8 = vld [vmem:[%s1814_s8 + $0x98] sm:$0xff]  }
  0x22   : > { %1563 = vmatmul.mubr.msk.bf16.gmra.mrb[4].mxu0 %vm491_vm0, %v1653_v12  ;;  %1595 = vmatmul.mubr.msk.bf16.gmra.mrb[4].mxu1 %vm491_vm0, %v1654_v13  ;;  %v1481_v13 = vld [vmem:[%s1814_s8 + $0x10] sm:$0xff]  }
  0x23   : > { %1566 = vmatprep.mubr.msk.bf16.mxu0 %vm491_vm0, %v1655_v14  ;;  %1598 = vmatprep.mubr.msk.bf16.mxu1 %vm491_vm0, %v1656_v15  ;;  %v1497_v14 = vld [vmem:[%s1814_s8 + $0x90] sm:$0xff]   ;;  %v1363_v39 = vunpack.c.h.bf16 %v1481_v13 }
  0x24   : > { %v1427_v40 = vunpack.c.h.bf16 %v1497_v14 }
  0x2a   : > { %1567 = vmatmul.mubr.msk.bf16.gmra.mrb[8].mxu0 %vm491_vm0, %v1657_v16  ;;  %1599 = vmatmul.mubr.msk.bf16.gmra.mrb[8].mxu1 %vm491_vm0, %v1658_v17 }
  0x2b   : > { %1570 = vmatprep.mubr.msk.bf16.mxu0 %vm491_vm0, %v1659_v18  ;;  %1602 = vmatprep.mubr.msk.bf16.mxu1 %vm491_vm0, %v1660_v19 }
  0x32   : > { %1571 = vmatmul.mubr.msk.bf16.gmra.mrb[12].mxu0 %vm491_vm0, %v1661_v20  ;;  %1603 = vmatmul.mubr.msk.bf16.gmra.mrb[12].mxu1 %vm491_vm0, %v1662_v21  ;;  %v1366_v21 = vunpack.c.l.bf16 %v1482_v7 }
  0x33   : > { %1574 = vmatprep.mubr.msk.bf16.mxu0 %vm491_vm0, %v1663_v22  ;;  %1606 = vmatprep.mubr.msk.bf16.mxu1 %vm491_vm0, %v1664_v23  ;;  %v1430_v22 = vunpack.c.l.bf16 %v1498_v8 }
  0x3a   : > { %1575 = vmatmul.mubr.msk.bf16.gmra.mrb[16].mxu0 %vm491_vm0, %v1665_v24  ;;  %1607 = vmatmul.mubr.msk.bf16.gmra.mrb[16].mxu1 %vm491_vm0, %v1666_v25 }
  0x3b   : > { %1578 = vmatprep.mubr.msk.bf16.mxu0 %vm491_vm0, %v1667_v26  ;;  %1610 = vmatprep.mubr.msk.bf16.mxu1 %vm491_vm0, %v1668_v27  ;;  %v1362_v27 = vunpack.c.l.bf16 %v1481_v13 }
  0x42   : > { %1579 = vmatmul.mubr.msk.bf16.gmra.mrb[20].mxu0 %vm491_vm0, %v1669_v28  ;;  %1611 = vmatmul.mubr.msk.bf16.gmra.mrb[20].mxu1 %vm491_vm0, %v1670_v29  ;;  %v1426_v28 = vunpack.c.l.bf16 %v1497_v14 }
  0x43   : > { %1582 = vmatprep.mubr.msk.bf16.mxu0 %vm491_vm0, %v1671_v30  ;;  %1614 = vmatprep.mubr.msk.bf16.mxu1 %vm491_vm0, %v1672_v31 }
  0x4a   : > { %1583 = vmatmul.mubr.msk.bf16.gmra.mrb[24].mxu0 %vm491_vm0, %v1673_v32  ;;  %1615 = vmatmul.mubr.msk.bf16.gmra.mrb[24].mxu1 %vm491_vm0, %v1674_v33  ;;  %v1367_v33 = vunpack.c.h.bf16 %v1482_v7 }
  0x4b   : > { %1586 = vmatprep.mubr.msk.bf16.mxu0 %vm491_vm0, %v1675_v34  ;;  %1618 = vmatprep.mubr.msk.bf16.mxu1 %vm491_vm0, %v1676_v35  ;;  %v1431_v34 = vunpack.c.h.bf16 %v1498_v8 }
  0x52   : > { %1587 = vmatmul.mubr.msk.bf16.gmra.mrb[28].mxu0 %vm491_vm0, %v1677_v36  ;;  %1619 = vmatmul.mubr.msk.bf16.gmra.mrb[28].mxu1 %vm491_vm0, %v1678_v37 }
  0xed   : > { %v1560_v45 = vpop.f32.mrb[0].mxu0  ;;  %v1592_v46 = vpop.f32.mrb[0].mxu1 }
  0xee   : > { %v635_v49 = vadd.f32 %v1560_v45, %v1823_v42  ;;  %v763_v50 = vadd.f32 %v1592_v46, %v1823_v42  ;;  %v626_v51 = vpop.f32.mrb[1].mxu0  ;;  %v754_v52 = vpop.f32.mrb[1].mxu1 }
  0xef   : > { %v627_v55 = vadd.f32 %v1823_v42, %v626_v51  ;;  %v755_v56 = vadd.f32 %v1823_v42, %v754_v52  ;;  %v1561_v57 = vpop.f32.mrb[2].mxu0  ;;  %v1593_v58 = vpop.f32.mrb[2].mxu1  ;;  %v1484_v52 = vld [vmem:[%s1814_s8 + $0x28] sm:$0xff]  }
  0xf0   : > { %v1011_v61 = vadd.f32 %v1358_v43, %v635_v49  ;;  %v1043_v62 = vadd.f32 %v1422_v44, %v763_v50  ;;  %v638_v63 = vadd.f32 %v1561_v57, %v1823_v42  ;;  %v766_v0 = vadd.f32 %v1593_v58, %v1823_v42  ;;  %v629_v1 = vpop.f32.mrb[3].mxu0  ;;  %v757_v2 = vpop.f32.mrb[3].mxu1  ;;  %v1483_v58 = vld [vmem:[%s1814_s8 + $0x20] sm:$0xff]  }
  0xf1   : > { %v1009_v3 = vadd.f32 %v1354_v47, %v627_v55  ;;  %v1041_v4 = vadd.f32 %v1418_v48, %v755_v56  ;;  %v630_v5 = vadd.f32 %v1823_v42, %v629_v1  ;;  %v758_v6 = vadd.f32 %v1823_v42, %v757_v2 }
  0xf2   : > { %v1075_v9 = vmax.f32 %v1011_v61, 0.0  ;;  %v1107_v10 = vmax.f32 %v1043_v62, 0.0  ;;  %v1012_v11 = vadd.f32 %v1359_v53, %v638_v63  ;;  %v1044_v12 = vadd.f32 %v1423_v54, %v766_v0  ;;  %v1500_v53 = vld [vmem:[%s1814_s8 + $0xa8] sm:$0xff]  }
  0xf3   : > { %v1073_v15 = vmax.f32 %v1009_v3, 0.0  ;;  %v1105_v16 = vmax.f32 %v1041_v4, 0.0  ;;  %v1010_v17 = vadd.f32 %v1355_v59, %v630_v5  ;;  %v1042_v18 = vadd.f32 %v1419_v60, %v758_v6  ;;  %v1499_v59 = vld [vmem:[%s1814_s8 + $0xa0] sm:$0xff]  }
  0xf4   : > { %1139 = vst [vmem:[%s1835_s14 + $0x10] sm:$0xff] %v1075_v9  ;;  %1171 = vst [vmem:[%s1835_s14 + $0x110] sm:$0xff] %v1107_v10  ;;  %v1076_v19 = vmax.f32 %v1012_v11, 0.0  ;;  %v1108_v20 = vmax.f32 %v1044_v12, 0.0  ;;  %v1374_v2 = vunpack.c.l.bf16 %v1484_v52  ;;  %v1438_v3 = vunpack.c.l.bf16 %v1500_v53 }
  0xf5   : > { %1137 = vst [vmem:[%s1835_s14] sm:$0xff] %v1073_v15  ;;  %1169 = vst [vmem:[%s1835_s14 + $0x100] sm:$0xff] %v1105_v16  ;;  %v1074_v23 = vmax.f32 %v1010_v17, 0.0  ;;  %v1106_v24 = vmax.f32 %v1042_v18, 0.0  ;;  %v1564_v25 = vpop.f32.mrb[4].mxu0  ;;  %v1596_v26 = vpop.f32.mrb[4].mxu1  ;;  %v1370_v8 = vunpack.c.l.bf16 %v1483_v58  ;;  %v1434_v9 = vunpack.c.l.bf16 %v1499_v59 }
  0xf6   : > { %1140 = vst [vmem:[%s1835_s14 + $0x18] sm:$0xff] %v1076_v19  ;;  %1172 = vst [vmem:[%s1835_s14 + $0x118] sm:$0xff] %v1108_v20  ;;  %v651_v29 = vadd.f32 %v1564_v25, %v1823_v42  ;;  %v779_v30 = vadd.f32 %v1596_v26, %v1823_v42  ;;  %v642_v31 = vpop.f32.mrb[5].mxu0  ;;  %v770_v32 = vpop.f32.mrb[5].mxu1  ;;  %v1375_v14 = vunpack.c.h.bf16 %v1484_v52  ;;  %v1439_v15 = vunpack.c.h.bf16 %v1500_v53 }
  0xf7   : > { %1138 = vst [vmem:[%s1835_s14 + $0x8] sm:$0xff] %v1074_v23  ;;  %1170 = vst [vmem:[%s1835_s14 + $0x108] sm:$0xff] %v1106_v24  ;;  %v643_v35 = vadd.f32 %v1823_v42, %v642_v31  ;;  %v771_v36 = vadd.f32 %v1823_v42, %v770_v32  ;;  %v1565_v37 = vpop.f32.mrb[6].mxu0  ;;  %v1597_v38 = vpop.f32.mrb[6].mxu1  ;;  %v1371_v20 = vunpack.c.h.bf16 %v1483_v58  ;;  %v1486_v32 = vld [vmem:[%s1814_s8 + $0x38] sm:$0xff]  }
  0xf8   : > { %v1015_v41 = vadd.f32 %v1366_v21, %v651_v29  ;;  %v1047_v43 = vadd.f32 %v1430_v22, %v779_v30  ;;  %v654_v44 = vadd.f32 %v1565_v37, %v1823_v42  ;;  %v782_v45 = vadd.f32 %v1597_v38, %v1823_v42  ;;  %v645_v46 = vpop.f32.mrb[7].mxu0  ;;  %v773_v47 = vpop.f32.mrb[7].mxu1  ;;  %v1485_v38 = vld [vmem:[%s1814_s8 + $0x30] sm:$0xff]  }
  0xf9   : > { %v1013_v48 = vadd.f32 %v1362_v27, %v643_v35  ;;  %v1045_v49 = vadd.f32 %v1426_v28, %v771_v36  ;;  %v646_v50 = vadd.f32 %v1823_v42, %v645_v46  ;;  %v774_v51 = vadd.f32 %v1823_v42, %v773_v47 }
  0xfa   : > { %v1079_v54 = vmax.f32 %v1015_v41, 0.0  ;;  %v1111_v55 = vmax.f32 %v1047_v43, 0.0  ;;  %v1016_v56 = vadd.f32 %v1367_v33, %v654_v44  ;;  %v1048_v57 = vadd.f32 %v1431_v34, %v782_v45  ;;  %v1502_v33 = vld [vmem:[%s1814_s8 + $0xb8] sm:$0xff]  }
  0xfb   : > { %v1077_v60 = vmax.f32 %v1013_v48, 0.0  ;;  %v1109_v61 = vmax.f32 %v1045_v49, 0.0  ;;  %v1014_v62 = vadd.f32 %v1363_v39, %v646_v50  ;;  %v1046_v63 = vadd.f32 %v1427_v40, %v774_v51  ;;  %v1501_v39 = vld [vmem:[%s1814_s8 + $0xb0] sm:$0xff]  }
  0xfc   : > { %1143 = vst [vmem:[%s1835_s14 + $0x30] sm:$0xff] %v1079_v54  ;;  %1175 = vst [vmem:[%s1835_s14 + $0x130] sm:$0xff] %v1111_v55  ;;  %v1080_v0 = vmax.f32 %v1016_v56, 0.0  ;;  %v1112_v1 = vmax.f32 %v1048_v57, 0.0  ;;  %v1435_v21 = vunpack.c.h.bf16 %v1499_v59  ;;  %v1382_v47 = vunpack.c.l.bf16 %v1486_v32 }
  0xfd   : > { %1141 = vst [vmem:[%s1835_s14 + $0x20] sm:$0xff] %v1077_v60  ;;  %1173 = vst [vmem:[%s1835_s14 + $0x120] sm:$0xff] %v1109_v61  ;;  %v1078_v4 = vmax.f32 %v1014_v62, 0.0  ;;  %v1110_v5 = vmax.f32 %v1046_v63, 0.0  ;;  %v1568_v6 = vpop.f32.mrb[8].mxu0  ;;  %v1600_v7 = vpop.f32.mrb[8].mxu1  ;;  %v1446_v48 = vunpack.c.l.bf16 %v1502_v33  ;;  %v1378_v53 = vunpack.c.l.bf16 %v1485_v38 }
  0xfe   : > { %1144 = vst [vmem:[%s1835_s14 + $0x38] sm:$0xff] %v1080_v0  ;;  %1176 = vst [vmem:[%s1835_s14 + $0x138] sm:$0xff] %v1112_v1  ;;  %v667_v10 = vadd.f32 %v1568_v6, %v1823_v42  ;;  %v795_v11 = vadd.f32 %v1600_v7, %v1823_v42  ;;  %v658_v12 = vpop.f32.mrb[9].mxu0  ;;  %v786_v13 = vpop.f32.mrb[9].mxu1  ;;  %v1442_v54 = vunpack.c.l.bf16 %v1501_v39  ;;  %v1383_v59 = vunpack.c.h.bf16 %v1486_v32 }
  0xff   : > { %1142 = vst [vmem:[%s1835_s14 + $0x28] sm:$0xff] %v1078_v4  ;;  %1174 = vst [vmem:[%s1835_s14 + $0x128] sm:$0xff] %v1110_v5  ;;  %v659_v16 = vadd.f32 %v1823_v42, %v658_v12  ;;  %v787_v17 = vadd.f32 %v1823_v42, %v786_v13  ;;  %v1569_v18 = vpop.f32.mrb[10].mxu0  ;;  %v1601_v19 = vpop.f32.mrb[10].mxu1  ;;  %v1447_v60 = vunpack.c.h.bf16 %v1502_v33  ;;  %v1379_v1 = vunpack.c.h.bf16 %v1485_v38  ;;  %v1488_v13 = vld [vmem:[%s1814_s8 + $0x48] sm:$0xff]  }
 0x100   : > { %v1019_v22 = vadd.f32 %v1374_v2, %v667_v10  ;;  %v1051_v23 = vadd.f32 %v1438_v3, %v795_v11  ;;  %v670_v24 = vadd.f32 %v1569_v18, %v1823_v42  ;;  %v798_v25 = vadd.f32 %v1601_v19, %v1823_v42  ;;  %v661_v26 = vpop.f32.mrb[11].mxu0  ;;  %v789_v27 = vpop.f32.mrb[11].mxu1  ;;  %v1487_v19 = vld [vmem:[%s1814_s8 + $0x40] sm:$0xff]  }
 0x101   : > { %v1017_v28 = vadd.f32 %v1370_v8, %v659_v16  ;;  %v1049_v29 = vadd.f32 %v1434_v9, %v787_v17  ;;  %v662_v30 = vadd.f32 %v1823_v42, %v661_v26  ;;  %v790_v31 = vadd.f32 %v1823_v42, %v789_v27 }
 0x102   : > { %v1083_v34 = vmax.f32 %v1019_v22, 0.0  ;;  %v1115_v35 = vmax.f32 %v1051_v23, 0.0  ;;  %v1020_v36 = vadd.f32 %v1375_v14, %v670_v24  ;;  %v1052_v37 = vadd.f32 %v1439_v15, %v798_v25  ;;  %v1504_v14 = vld [vmem:[%s1814_s8 + $0xc8] sm:$0xff]  }
 0x103   : > { %v1081_v40 = vmax.f32 %v1017_v28, 0.0  ;;  %v1113_v41 = vmax.f32 %v1049_v29, 0.0  ;;  %v1018_v43 = vadd.f32 %v1371_v20, %v662_v30  ;;  %v1050_v44 = vadd.f32 %v1435_v21, %v790_v31  ;;  %v1503_v20 = vld [vmem:[%s1814_s8 + $0xc0] sm:$0xff]  }
 0x104   : > { %1147 = vst [vmem:[%s1835_s14 + $0x50] sm:$0xff] %v1083_v34  ;;  %1179 = vst [vmem:[%s1835_s14 + $0x150] sm:$0xff] %v1115_v35  ;;  %v1084_v45 = vmax.f32 %v1020_v36, 0.0  ;;  %v1116_v46 = vmax.f32 %v1052_v37, 0.0  ;;  %v1443_v2 = vunpack.c.h.bf16 %v1501_v39  ;;  %v1390_v27 = vunpack.c.l.bf16 %v1488_v13 }
 0x105   : > { %1145 = vst [vmem:[%s1835_s14 + $0x40] sm:$0xff] %v1081_v40  ;;  %1177 = vst [vmem:[%s1835_s14 + $0x140] sm:$0xff] %v1113_v41  ;;  %v1082_v49 = vmax.f32 %v1018_v43, 0.0  ;;  %v1114_v50 = vmax.f32 %v1050_v44, 0.0  ;;  %v1572_v51 = vpop.f32.mrb[12].mxu0  ;;  %v1604_v52 = vpop.f32.mrb[12].mxu1  ;;  %v1454_v28 = vunpack.c.l.bf16 %v1504_v14  ;;  %v1386_v33 = vunpack.c.l.bf16 %v1487_v19 }
 0x106   : > { %1148 = vst [vmem:[%s1835_s14 + $0x58] sm:$0xff] %v1084_v45  ;;  %1180 = vst [vmem:[%s1835_s14 + $0x158] sm:$0xff] %v1116_v46  ;;  %v683_v55 = vadd.f32 %v1572_v51, %v1823_v42  ;;  %v811_v56 = vadd.f32 %v1604_v52, %v1823_v42  ;;  %v674_v57 = vpop.f32.mrb[13].mxu0  ;;  %v802_v58 = vpop.f32.mrb[13].mxu1  ;;  %v1450_v34 = vunpack.c.l.bf16 %v1503_v20  ;;  %v1391_v39 = vunpack.c.h.bf16 %v1488_v13 }
 0x107   : > { %1146 = vst [vmem:[%s1835_s14 + $0x48] sm:$0xff] %v1082_v49  ;;  %1178 = vst [vmem:[%s1835_s14 + $0x148] sm:$0xff] %v1114_v50  ;;  %v675_v61 = vadd.f32 %v1823_v42, %v674_v57  ;;  %v803_v62 = vadd.f32 %v1823_v42, %v802_v58  ;;  %v1573_v63 = vpop.f32.mrb[14].mxu0  ;;  %v1605_v0 = vpop.f32.mrb[14].mxu1  ;;  %v1455_v40 = vunpack.c.h.bf16 %v1504_v14  ;;  %v1387_v46 = vunpack.c.h.bf16 %v1487_v19  ;;  %v1490_v58 = vld [vmem:[%s1814_s8 + $0x58] sm:$0xff]  }
 0x108   : > { %v1023_v3 = vadd.f32 %v1382_v47, %v683_v55  ;;  %v1055_v4 = vadd.f32 %v1446_v48, %v811_v56  ;;  %v686_v5 = vadd.f32 %v1573_v63, %v1823_v42  ;;  %v814_v6 = vadd.f32 %v1605_v0, %v1823_v42  ;;  %v677_v7 = vpop.f32.mrb[15].mxu0  ;;  %v805_v8 = vpop.f32.mrb[15].mxu1  ;;  %v1489_v0 = vld [vmem:[%s1814_s8 + $0x50] sm:$0xff]  }
 0x109   : > { %v1021_v9 = vadd.f32 %v1378_v53, %v675_v61  ;;  %v1053_v10 = vadd.f32 %v1442_v54, %v803_v62  ;;  %v678_v11 = vadd.f32 %v1823_v42, %v677_v7  ;;  %v806_v12 = vadd.f32 %v1823_v42, %v805_v8 }
 0x10a   : > { %v1087_v15 = vmax.f32 %v1023_v3, 0.0  ;;  %v1119_v16 = vmax.f32 %v1055_v4, 0.0  ;;  %v1024_v17 = vadd.f32 %v1383_v59, %v686_v5  ;;  %v1056_v18 = vadd.f32 %v1447_v60, %v814_v6  ;;  %v1506_v59 = vld [vmem:[%s1814_s8 + $0xd8] sm:$0xff]  }
 0x10b   : > { %v1085_v21 = vmax.f32 %v1021_v9, 0.0  ;;  %v1117_v22 = vmax.f32 %v1053_v10, 0.0  ;;  %v1022_v23 = vadd.f32 %v1379_v1, %v678_v11  ;;  %v1054_v24 = vadd.f32 %v1443_v2, %v806_v12  ;;  %v1505_v1 = vld [vmem:[%s1814_s8 + $0xd0] sm:$0xff]  }
 0x10c   : > { %1151 = vst [vmem:[%s1835_s14 + $0x70] sm:$0xff] %v1087_v15  ;;  %1183 = vst [vmem:[%s1835_s14 + $0x170] sm:$0xff] %v1119_v16  ;;  %v1088_v25 = vmax.f32 %v1024_v17, 0.0  ;;  %v1120_v26 = vmax.f32 %v1056_v18, 0.0  ;;  %v1451_v47 = vunpack.c.h.bf16 %v1503_v20  ;;  %v1398_v8 = vunpack.c.l.bf16 %v1490_v58 }
 0x10d   : > { %1149 = vst [vmem:[%s1835_s14 + $0x60] sm:$0xff] %v1085_v21  ;;  %1181 = vst [vmem:[%s1835_s14 + $0x160] sm:$0xff] %v1117_v22  ;;  %v1086_v29 = vmax.f32 %v1022_v23, 0.0  ;;  %v1118_v30 = vmax.f32 %v1054_v24, 0.0  ;;  %v1576_v31 = vpop.f32.mrb[16].mxu0  ;;  %v1608_v32 = vpop.f32.mrb[16].mxu1  ;;  %v1462_v9 = vunpack.c.l.bf16 %v1506_v59  ;;  %v1394_v14 = vunpack.c.l.bf16 %v1489_v0 }
 0x10e   : > { %1152 = vst [vmem:[%s1835_s14 + $0x78] sm:$0xff] %v1088_v25  ;;  %1184 = vst [vmem:[%s1835_s14 + $0x178] sm:$0xff] %v1120_v26  ;;  %v699_v35 = vadd.f32 %v1576_v31, %v1823_v42  ;;  %v827_v36 = vadd.f32 %v1608_v32, %v1823_v42  ;;  %v690_v37 = vpop.f32.mrb[17].mxu0  ;;  %v818_v38 = vpop.f32.mrb[17].mxu1  ;;  %v1458_v15 = vunpack.c.l.bf16 %v1505_v1  ;;  %v1399_v20 = vunpack.c.h.bf16 %v1490_v58 }
 0x10f   : > { %1150 = vst [vmem:[%s1835_s14 + $0x68] sm:$0xff] %v1086_v29  ;;  %1182 = vst [vmem:[%s1835_s14 + $0x168] sm:$0xff] %v1118_v30  ;;  %v691_v41 = vadd.f32 %v1823_v42, %v690_v37  ;;  %v819_v43 = vadd.f32 %v1823_v42, %v818_v38  ;;  %v1577_v44 = vpop.f32.mrb[18].mxu0  ;;  %v1609_v45 = vpop.f32.mrb[18].mxu1  ;;  %v1463_v21 = vunpack.c.h.bf16 %v1506_v59  ;;  %v1395_v26 = vunpack.c.h.bf16 %v1489_v0  ;;  %v1492_v38 = vld [vmem:[%s1814_s8 + $0x68] sm:$0xff]  }
 0x110   : > { %v1027_v48 = vadd.f32 %v1390_v27, %v699_v35  ;;  %v1059_v49 = vadd.f32 %v1454_v28, %v827_v36  ;;  %v702_v50 = vadd.f32 %v1577_v44, %v1823_v42  ;;  %v830_v51 = vadd.f32 %v1609_v45, %v1823_v42  ;;  %v693_v52 = vpop.f32.mrb[19].mxu0  ;;  %v821_v53 = vpop.f32.mrb[19].mxu1  ;;  %v1491_v45 = vld [vmem:[%s1814_s8 + $0x60] sm:$0xff]  }
 0x111   : > { %v1025_v54 = vadd.f32 %v1386_v33, %v691_v41  ;;  %v1057_v55 = vadd.f32 %v1450_v34, %v819_v43  ;;  %v694_v56 = vadd.f32 %v1823_v42, %v693_v52  ;;  %v822_v57 = vadd.f32 %v1823_v42, %v821_v53 }
 0x112   : > { %v1091_v60 = vmax.f32 %v1027_v48, 0.0  ;;  %v1123_v61 = vmax.f32 %v1059_v49, 0.0  ;;  %v1028_v62 = vadd.f32 %v1391_v39, %v702_v50  ;;  %v1060_v63 = vadd.f32 %v1455_v40, %v830_v51  ;;  %v1508_v39 = vld [vmem:[%s1814_s8 + $0xe8] sm:$0xff]  }
 0x113   : > { %v1089_v2 = vmax.f32 %v1025_v54, 0.0  ;;  %v1121_v3 = vmax.f32 %v1057_v55, 0.0  ;;  %v1026_v4 = vadd.f32 %v1387_v46, %v694_v56  ;;  %v1058_v5 = vadd.f32 %v1451_v47, %v822_v57  ;;  %v1507_v46 = vld [vmem:[%s1814_s8 + $0xe0] sm:$0xff]  }
 0x114   : > { %1155 = vst [vmem:[%s1835_s14 + $0x90] sm:$0xff] %v1091_v60  ;;  %1187 = vst [vmem:[%s1835_s14 + $0x190] sm:$0xff] %v1123_v61  ;;  %v1092_v6 = vmax.f32 %v1028_v62, 0.0  ;;  %v1124_v7 = vmax.f32 %v1060_v63, 0.0  ;;  %v1459_v27 = vunpack.c.h.bf16 %v1505_v1  ;;  %v1406_v53 = vunpack.c.l.bf16 %v1492_v38 }
 0x115   : > { %1153 = vst [vmem:[%s1835_s14 + $0x80] sm:$0xff] %v1089_v2  ;;  %1185 = vst [vmem:[%s1835_s14 + $0x180] sm:$0xff] %v1121_v3  ;;  %v1090_v10 = vmax.f32 %v1026_v4, 0.0  ;;  %v1122_v11 = vmax.f32 %v1058_v5, 0.0  ;;  %v1580_v12 = vpop.f32.mrb[20].mxu0  ;;  %v1612_v13 = vpop.f32.mrb[20].mxu1  ;;  %v1470_v54 = vunpack.c.l.bf16 %v1508_v39  ;;  %v1402_v59 = vunpack.c.l.bf16 %v1491_v45 }
 0x116   : > { %1156 = vst [vmem:[%s1835_s14 + $0x98] sm:$0xff] %v1092_v6  ;;  %1188 = vst [vmem:[%s1835_s14 + $0x198] sm:$0xff] %v1124_v7  ;;  %v715_v16 = vadd.f32 %v1580_v12, %v1823_v42  ;;  %v843_v17 = vadd.f32 %v1612_v13, %v1823_v42  ;;  %v706_v18 = vpop.f32.mrb[21].mxu0  ;;  %v834_v19 = vpop.f32.mrb[21].mxu1  ;;  %v1466_v60 = vunpack.c.l.bf16 %v1507_v46  ;;  %v1407_v1 = vunpack.c.h.bf16 %v1492_v38 }
 0x117   : > { %1154 = vst [vmem:[%s1835_s14 + $0x88] sm:$0xff] %v1090_v10  ;;  %1186 = vst [vmem:[%s1835_s14 + $0x188] sm:$0xff] %v1122_v11  ;;  %v707_v22 = vadd.f32 %v1823_v42, %v706_v18  ;;  %v835_v23 = vadd.f32 %v1823_v42, %v834_v19  ;;  %v1581_v24 = vpop.f32.mrb[22].mxu0  ;;  %v1613_v25 = vpop.f32.mrb[22].mxu1  ;;  %v1471_v2 = vunpack.c.h.bf16 %v1508_v39  ;;  %v1403_v7 = vunpack.c.h.bf16 %v1491_v45  ;;  %v1494_v19 = vld [vmem:[%s1814_s8 + $0x78] sm:$0xff]  }
 0x118   : > { %v1031_v28 = vadd.f32 %v1398_v8, %v715_v16  ;;  %v1063_v29 = vadd.f32 %v1462_v9, %v843_v17  ;;  %v718_v30 = vadd.f32 %v1581_v24, %v1823_v42  ;;  %v846_v31 = vadd.f32 %v1613_v25, %v1823_v42  ;;  %v709_v32 = vpop.f32.mrb[23].mxu0  ;;  %v837_v33 = vpop.f32.mrb[23].mxu1  ;;  %v1493_v25 = vld [vmem:[%s1814_s8 + $0x70] sm:$0xff]  }
 0x119   : > { %v1029_v34 = vadd.f32 %v1394_v14, %v707_v22  ;;  %v1061_v35 = vadd.f32 %v1458_v15, %v835_v23  ;;  %v710_v36 = vadd.f32 %v1823_v42, %v709_v32  ;;  %v838_v37 = vadd.f32 %v1823_v42, %v837_v33 }
 0x11a   : > { %v1095_v40 = vmax.f32 %v1031_v28, 0.0  ;;  %v1127_v41 = vmax.f32 %v1063_v29, 0.0  ;;  %v1032_v43 = vadd.f32 %v1399_v20, %v718_v30  ;;  %v1064_v44 = vadd.f32 %v1463_v21, %v846_v31  ;;  %v1510_v20 = vld [vmem:[%s1814_s8 + $0xf8] sm:$0xff]  }
 0x11b   : > { %v1093_v47 = vmax.f32 %v1029_v34, 0.0  ;;  %v1125_v48 = vmax.f32 %v1061_v35, 0.0  ;;  %v1030_v49 = vadd.f32 %v1395_v26, %v710_v36  ;;  %v1062_v50 = vadd.f32 %v1459_v27, %v838_v37  ;;  %v1509_v26 = vld [vmem:[%s1814_s8 + $0xf0] sm:$0xff]  }
 0x11c   : > { %1159 = vst [vmem:[%s1835_s14 + $0xb0] sm:$0xff] %v1095_v40  ;;  %1191 = vst [vmem:[%s1835_s14 + $0x1b0] sm:$0xff] %v1127_v41  ;;  %v1096_v51 = vmax.f32 %v1032_v43, 0.0  ;;  %v1128_v52 = vmax.f32 %v1064_v44, 0.0  ;;  %v1467_v8 = vunpack.c.h.bf16 %v1507_v46  ;;  %v1414_v33 = vunpack.c.l.bf16 %v1494_v19 }
 0x11d   : > { %1157 = vst [vmem:[%s1835_s14 + $0xa0] sm:$0xff] %v1093_v47  ;;  %1189 = vst [vmem:[%s1835_s14 + $0x1a0] sm:$0xff] %v1125_v48  ;;  %v1094_v55 = vmax.f32 %v1030_v49, 0.0  ;;  %v1126_v56 = vmax.f32 %v1062_v50, 0.0  ;;  %v1584_v57 = vpop.f32.mrb[24].mxu0  ;;  %v1616_v58 = vpop.f32.mrb[24].mxu1  ;;  %v1478_v34 = vunpack.c.l.bf16 %v1510_v20  ;;  %v1410_v39 = vunpack.c.l.bf16 %v1493_v25 }
 0x11e   : > { %1160 = vst [vmem:[%s1835_s14 + $0xb8] sm:$0xff] %v1096_v51  ;;  %1192 = vst [vmem:[%s1835_s14 + $0x1b8] sm:$0xff] %v1128_v52  ;;  %v731_v61 = vadd.f32 %v1584_v57, %v1823_v42  ;;  %v859_v62 = vadd.f32 %v1616_v58, %v1823_v42  ;;  %v722_v63 = vpop.f32.mrb[25].mxu0  ;;  %v850_v0 = vpop.f32.mrb[25].mxu1  ;;  %v1474_v40 = vunpack.c.l.bf16 %v1509_v26  ;;  %v1415_v46 = vunpack.c.h.bf16 %v1494_v19 }
 0x11f   : > { %1158 = vst [vmem:[%s1835_s14 + $0xa8] sm:$0xff] %v1094_v55  ;;  %1190 = vst [vmem:[%s1835_s14 + $0x1a8] sm:$0xff] %v1126_v56  ;;  %v723_v3 = vadd.f32 %v1823_v42, %v722_v63  ;;  %v851_v4 = vadd.f32 %v1823_v42, %v850_v0  ;;  %v1585_v5 = vpop.f32.mrb[26].mxu0  ;;  %v1617_v6 = vpop.f32.mrb[26].mxu1  ;;  %v1479_v47 = vunpack.c.h.bf16 %v1510_v20  ;;  %v1411_v52 = vunpack.c.h.bf16 %v1493_v25 }
 0x120   : > { %v1035_v9 = vadd.f32 %v1406_v53, %v731_v61  ;;  %v1067_v10 = vadd.f32 %v1470_v54, %v859_v62  ;;  %v734_v11 = vadd.f32 %v1585_v5, %v1823_v42  ;;  %v862_v12 = vadd.f32 %v1617_v6, %v1823_v42  ;;  %v725_v13 = vpop.f32.mrb[27].mxu0  ;;  %v853_v14 = vpop.f32.mrb[27].mxu1 }
 0x121   : > { %v1033_v15 = vadd.f32 %v1402_v59, %v723_v3  ;;  %v1065_v16 = vadd.f32 %v1466_v60, %v851_v4  ;;  %v726_v17 = vadd.f32 %v1823_v42, %v725_v13  ;;  %v854_v18 = vadd.f32 %v1823_v42, %v853_v14 }
 0x122   : > { %v1099_v21 = vmax.f32 %v1035_v9, 0.0  ;;  %v1131_v22 = vmax.f32 %v1067_v10, 0.0  ;;  %v1036_v23 = vadd.f32 %v1407_v1, %v734_v11  ;;  %v1068_v24 = vadd.f32 %v1471_v2, %v862_v12 }
 0x123   : > { %v1097_v27 = vmax.f32 %v1033_v15, 0.0  ;;  %v1129_v28 = vmax.f32 %v1065_v16, 0.0  ;;  %v1034_v29 = vadd.f32 %v1403_v7, %v726_v17  ;;  %v1066_v30 = vadd.f32 %v1467_v8, %v854_v18 }
 0x124   : > { %1163 = vst [vmem:[%s1835_s14 + $0xd0] sm:$0xff] %v1099_v21  ;;  %1195 = vst [vmem:[%s1835_s14 + $0x1d0] sm:$0xff] %v1131_v22  ;;  %v1100_v31 = vmax.f32 %v1036_v23, 0.0  ;;  %v1132_v32 = vmax.f32 %v1068_v24, 0.0  ;;  %v1475_v53 = vunpack.c.h.bf16 %v1509_v26 }
 0x125   : > { %1161 = vst [vmem:[%s1835_s14 + $0xc0] sm:$0xff] %v1097_v27  ;;  %1193 = vst [vmem:[%s1835_s14 + $0x1c0] sm:$0xff] %v1129_v28  ;;  %v1098_v35 = vmax.f32 %v1034_v29, 0.0  ;;  %v1130_v36 = vmax.f32 %v1066_v30, 0.0  ;;  %v1588_v37 = vpop.f32.mrb[28].mxu0  ;;  %v1620_v38 = vpop.f32.mrb[28].mxu1 }
 0x126   : > { %1164 = vst [vmem:[%s1835_s14 + $0xd8] sm:$0xff] %v1100_v31  ;;  %1196 = vst [vmem:[%s1835_s14 + $0x1d8] sm:$0xff] %v1132_v32  ;;  %v747_v41 = vadd.f32 %v1588_v37, %v1823_v42  ;;  %v875_v43 = vadd.f32 %v1620_v38, %v1823_v42  ;;  %v738_v44 = vpop.f32.mrb[29].mxu0  ;;  %v866_v45 = vpop.f32.mrb[29].mxu1 }
 0x127   : > { %1162 = vst [vmem:[%s1835_s14 + $0xc8] sm:$0xff] %v1098_v35  ;;  %1194 = vst [vmem:[%s1835_s14 + $0x1c8] sm:$0xff] %v1130_v36  ;;  %v739_v48 = vadd.f32 %v1823_v42, %v738_v44  ;;  %v867_v49 = vadd.f32 %v1823_v42, %v866_v45  ;;  %v1589_v50 = vpop.f32.mrb[30].mxu0  ;;  %v1621_v51 = vpop.f32.mrb[30].mxu1 }
 0x128   : > { %v1039_v54 = vadd.f32 %v1414_v33, %v747_v41  ;;  %v1071_v55 = vadd.f32 %v1478_v34, %v875_v43  ;;  %v750_v56 = vadd.f32 %v1589_v50, %v1823_v42  ;;  %v878_v57 = vadd.f32 %v1621_v51, %v1823_v42  ;;  %v741_v58 = vpop.f32.mrb[31].mxu0  ;;  %v869_v59 = vpop.f32.mrb[31].mxu1 }
 0x129   : > { %v1037_v60 = vadd.f32 %v1410_v39, %v739_v48  ;;  %v1069_v61 = vadd.f32 %v1474_v40, %v867_v49  ;;  %v742_v62 = vadd.f32 %v1823_v42, %v741_v58  ;;  %v870_v63 = vadd.f32 %v1823_v42, %v869_v59 }
 0x12a   : > { %v1103_v0 = vmax.f32 %v1039_v54, 0.0  ;;  %v1135_v1 = vmax.f32 %v1071_v55, 0.0  ;;  %v1040_v2 = vadd.f32 %v1415_v46, %v750_v56  ;;  %v1072_v3 = vadd.f32 %v1479_v47, %v878_v57 }
 0x12b   : > { %v1101_v4 = vmax.f32 %v1037_v60, 0.0  ;;  %v1133_v5 = vmax.f32 %v1069_v61, 0.0  ;;  %v1038_v6 = vadd.f32 %v1411_v52, %v742_v62  ;;  %v1070_v7 = vadd.f32 %v1475_v53, %v870_v63 }
 0x12c   : > { %1167 = vst [vmem:[%s1835_s14 + $0xf0] sm:$0xff] %v1103_v0  ;;  %1199 = vst [vmem:[%s1835_s14 + $0x1f0] sm:$0xff] %v1135_v1  ;;  %v1104_v8 = vmax.f32 %v1040_v2, 0.0  ;;  %v1136_v9 = vmax.f32 %v1072_v3, 0.0 }
 0x12d   : > { %1165 = vst [vmem:[%s1835_s14 + $0xe0] sm:$0xff] %v1101_v4  ;;  %1197 = vst [vmem:[%s1835_s14 + $0x1e0] sm:$0xff] %v1133_v5  ;;  %v1102_v10 = vmax.f32 %v1038_v6, 0.0  ;;  %v1134_v42 = vmax.f32 %v1070_v7, 0.0 }
 0x12e   : > { %1168 = vst [vmem:[%s1835_s14 + $0xf8] sm:$0xff] %v1104_v8  ;;  %1200 = vst [vmem:[%s1835_s14 + $0x1f8] sm:$0xff] %v1136_v9 }
 0x12f   : > { %1166 = vst [vmem:[%s1835_s14 + $0xe8] sm:$0xff] %v1102_v10  ;;  %1198 = vst [vmem:[%s1835_s14 + $0x1e8] sm:$0xff] %v1134_v42 }
 0x130 PF: > { %s14_s15 = sadd.s32 1, %s1685_s15  }
 0x131   : > { %p11_p4 = scmp.ge.s32.totalorder %s14_s15, 6  }
 0x133   :  { %13 = sbr.rel (!%p11_p4) target bundleno = 1 (0x1), region = 69 }

</bundles_post_ra>
